<compile_context>
chip_gen: v6e
topology: v6e:2x2x1
jax: 0.10.0
libtpu: 0.0.40
codegen_flags: <defaults>
</compile_context>

<pallas_src>
import jax
import jax.numpy as jnp
from jax import lax
from jax.experimental import pallas as pl
from jax.experimental.pallas import tpu as pltpu

EPS = 1e-5
NEG_SLOPE = 0.01  # nn.LeakyReLU default


def mlp_kernel(x_ref, gb_ref, w_ref, wb_ref, o_ref):
    # x_ref:  (B, C, TL)  raw NCHW-flattened input tile (no wrapper-side transpose)
    # gb_ref: (TL, 2)     column 0 = BatchNorm1d weight (gamma), column 1 = bias (beta)
    # w_ref:  (E, C)      Linear weight, PyTorch (out, in) layout
    # wb_ref: (2, E)      row 0 = Linear bias, row 1 = colsum_C(W) (for the folded BN shift)
    # o_ref:  (B, TL, E)  output tile (E = 128 lanes -> unmasked, lane-dense stores)
    x_bcl = x_ref[...].astype(jnp.float32)
    B, C, TL = x_bcl.shape
    inv_n = 1.0 / (B * C)

    # --- fused NCHW transpose: (B, C, TL) -> (B, TL, C); minor-dim flip on the XLU ---
    x = jnp.transpose(x_bcl, (0, 2, 1))                       # (B, TL, C)

    # --- BatchNorm1d train-mode stats per position l over (B, C), single pass ---
    s = jnp.sum(x, axis=2, keepdims=True)                     # (B, TL, 1)  lane reduce
    q = jnp.sum(x * x, axis=2, keepdims=True)                 # (B, TL, 1)
    s = jnp.sum(s, axis=0, keepdims=True)                     # (1, TL, 1)  cross-batch add
    q = jnp.sum(q, axis=0, keepdims=True)                     # (1, TL, 1)
    mean = s * inv_n
    var = q * inv_n - mean * mean                             # E[x^2] - mean^2 (biased)
    inv_std = lax.rsqrt(var + EPS)

    gb = gb_ref[...].astype(jnp.float32)                      # (TL, 2)
    gamma = gb[:, 0:1][None]                                  # (1, TL, 1)  same orientation as stats
    beta = gb[:, 1:2][None]                                   # (1, TL, 1)
    scale = gamma * inv_std                                   # (1, TL, 1)
    shift = beta - mean * scale                               # (1, TL, 1)
    # TODO(synk): BatchNorm1d running_mean/running_var updates are not produced
    # (they do not affect the forward output).

    # --- pre-matmul: single multiply (shift is folded through W into the bias term) ---
    xn = x * scale                                            # (B, TL, C)

    # --- Linear: one dense (B*TL, C) x (C, E) MXU matmul; W kept (E, C), contract dim 1 ---
    w = w_ref[...].astype(jnp.float32)                        # (E, C)
    y = lax.dot_general(xn.reshape(B * TL, C), w,
                        dimension_numbers=(((1,), (1,)), ((), ())),
                        precision=lax.Precision.HIGHEST,
                        preferred_element_type=jnp.float32)   # (B*TL, E)

    # --- bias + folded BN shift: y += shift_l * colsum_C(W) + b ---
    wb = wb_ref[...].astype(jnp.float32)                      # (2, E)
    bias_row = wb[0:1, :]                                     # (1, E)
    wsum_row = wb[1:2, :]                                     # (1, E)
    bias_comb = shift.reshape(TL, 1) * wsum_row + bias_row    # (TL, E)

    y = y.reshape(B, TL, -1) + bias_comb[None]                # (B, TL, E)

    # --- LeakyReLU: mul + max (cheaper than cmp/mul/select) ---
    y = jnp.maximum(y, NEG_SLOPE * y)

    o_ref[...] = y.astype(o_ref.dtype)


def mlp_forward(x, gamma, beta, w, bias, *, tl=None):
    """x: (B, C, H, W). gamma/beta: (L,). w: (E, C). bias: (E,). Returns (B, L, E)."""
    B, C, H, W = x.shape
    L = H * W
    E, Cw = w.shape
    assert Cw == C
    assert gamma.shape == (L,) and beta.shape == (L,) and bias.shape == (E,)
    if tl is None:
        tl = L                      # single grid step by default (problem is tiny vs VMEM)
    assert L % tl == 0 and tl % 8 == 0 and (tl == L or tl % 128 == 0)

    # Free contiguous reshape only (NO transpose here -- that is fused into the kernel).
    x_bcl = x.reshape(B, C, L)
    # Tiny parameter preps (would be precomputed once in a real model):
    gb = jnp.stack([gamma, beta], axis=1)                     # (L, 2)
    wb = jnp.stack([bias, jnp.sum(w, axis=1)], axis=0)        # (2, E): [bias; colsum_C(W)]

    out = pl.pallas_call(
        mlp_kernel,
        out_shape=jax.ShapeDtypeStruct((B, L, E), x.dtype),
        grid_spec=pl.GridSpec(
            grid=(L // tl,),
            in_specs=[
                pl.BlockSpec((B, C, tl), lambda i: (0, 0, i)),
                pl.BlockSpec((tl, 2), lambda i: (i, 0)),
                pl.BlockSpec((E, C), lambda i: (0, 0)),
                pl.BlockSpec((2, E), lambda i: (0, 0)),
            ],
            out_specs=pl.BlockSpec((B, tl, E), lambda i: (0, i, 0)),
        ),
        compiler_params=pltpu.CompilerParams(
            dimension_semantics=("parallel",),
        ),
        cost_estimate=pl.CostEstimate(
            flops=2 * B * L * C * E,
            transcendentals=0,
            bytes_accessed=4 * (B * C * L + E * C + B * L * E + 2 * L + 2 * E),
        ),
    )(x_bcl, gb, w, wb)

    return out                                                # already (B, L, E)


def mlp_reference(x, gamma, beta, w, bias):
    B, C, H, W = x.shape
    L = H * W
    xf = jnp.transpose(x.reshape(B, C, L), (0, 2, 1))             # (B, L, C)
    mean = jnp.mean(xf, axis=(0, 2), keepdims=True)               # per l over (B, C)
    var = jnp.mean((xf - mean) ** 2, axis=(0, 2), keepdims=True)  # biased (train-mode)
    xn = (xf - mean) / jnp.sqrt(var + EPS)
    xn = xn * gamma[None, :, None] + beta[None, :, None]
    y = jnp.einsum("blc,ec->ble", xn, w,
                   precision=lax.Precision.HIGHEST) + bias[None, None, :]
    return jnp.where(y > 0, y, NEG_SLOPE * y)


if __name__ == "__main__":
    # Small shapes consistent with the module: input_dim=C=128, embed_dim=E=128,
    # bn=8 -> H=W=8 so that H*W == bn*bn == 64.
    B, C, H, W = 2, 128, 8, 8
    L, E = H * W, 128

    key = jax.random.PRNGKey(0)
    kx, kg, kb, kw, kbb = jax.random.split(key, 5)
    x = jax.random.normal(kx, (B, C, H, W), dtype=jnp.float32)
    gamma = 1.0 + 0.1 * jax.random.normal(kg, (L,), dtype=jnp.float32)  # BN weight
    beta = 0.1 * jax.random.normal(kb, (L,), dtype=jnp.float32)         # BN bias
    w = 0.02 * jax.random.normal(kw, (E, C), dtype=jnp.float32)         # Linear weight (out, in)
    bias = 0.02 * jax.random.normal(kbb, (E,), dtype=jnp.float32)       # Linear bias

    out = mlp_forward(x, gamma, beta, w, bias)
    out = jax.block_until_ready(out)

    ref = mlp_reference(x, gamma, beta, w, bias)
    assert out.shape == (B, L, E), out.shape
    assert jnp.allclose(out, ref, atol=1e-4, rtol=1e-4), float(jnp.max(jnp.abs(out - ref)))

    print("KERNEL_OK")
</pallas_src>

<mosaic_0001>
module attributes {stable_mosaic.version = 11 : i64} {
  func.func @mlp_kernel(%arg0: i32, %arg1: memref<2x128x64xf32, #tpu.memory_space<vmem>>, %arg2: memref<64x2xf32, #tpu.memory_space<vmem>>, %arg3: memref<128x128xf32, #tpu.memory_space<vmem>>, %arg4: memref<2x128xf32, #tpu.memory_space<vmem>>, %arg5: memref<2x64x128xf32, #tpu.memory_space<vmem>>) attributes {dimension_semantics = [#tpu.dimension_semantics<parallel>], iteration_bounds = array<i64: 1>, scalar_prefetch = 0 : i64, scratch_operands = 0 : i64, tpu.core_type = #tpu.core_type<tc>, window_params = [{transform_indices = @transform_0, window_bounds = array<i64: 2, 128, 64>}, {transform_indices = @transform_1, window_bounds = array<i64: 64, 2>}, {pipeline_mode = #tpu.pipeline_mode<synchronous>, transform_indices = @transform_2, window_bounds = array<i64: 128, 128>}, {pipeline_mode = #tpu.pipeline_mode<synchronous>, transform_indices = @transform_3, window_bounds = array<i64: 2, 128>}, {transform_indices = @transform_4, window_bounds = array<i64: 2, 64, 128>}]} {
    %c0 = arith.constant 0 : index
    %c0_0 = arith.constant 0 : index
    %c0_1 = arith.constant 0 : index
    %0 = vector.load %arg1[%c0, %c0_0, %c0_1] : memref<2x128x64xf32, #tpu.memory_space<vmem>>, vector<2x128x64xf32>
    %1 = tpu.transpose %0, [0, 2, 1] : vector<2x128x64xf32> -> vector<2x64x128xf32>
    %cst = arith.constant dense<0.000000e+00> : vector<2x64xf32>
    %2 = vector.multi_reduction <add>, %1, %cst [2] : vector<2x64x128xf32> to vector<2x64xf32>
    %3 = vector.shape_cast %2 : vector<2x64xf32> to vector<2x64x1xf32>
    %4 = arith.mulf %1, %1 : vector<2x64x128xf32>
    %cst_2 = arith.constant dense<0.000000e+00> : vector<2x64xf32>
    %5 = vector.multi_reduction <add>, %4, %cst_2 [2] : vector<2x64x128xf32> to vector<2x64xf32>
    %6 = vector.shape_cast %5 : vector<2x64xf32> to vector<2x64x1xf32>
    %cst_3 = arith.constant dense<0.000000e+00> : vector<64x1xf32>
    %7 = vector.multi_reduction <add>, %3, %cst_3 [0] : vector<2x64x1xf32> to vector<64x1xf32>
    %8 = vector.shape_cast %7 : vector<64x1xf32> to vector<1x64x1xf32>
    %cst_4 = arith.constant dense<0.000000e+00> : vector<64x1xf32>
    %9 = vector.multi_reduction <add>, %6, %cst_4 [0] : vector<2x64x1xf32> to vector<64x1xf32>
    %10 = vector.shape_cast %9 : vector<64x1xf32> to vector<1x64x1xf32>
    %cst_5 = arith.constant 3.906250e-03 : f32
    %11 = vector.broadcast %cst_5 : f32 to vector<1x64x1xf32>
    %12 = arith.mulf %8, %11 : vector<1x64x1xf32>
    %cst_6 = arith.constant 3.906250e-03 : f32
    %13 = vector.broadcast %cst_6 : f32 to vector<1x64x1xf32>
    %14 = arith.mulf %10, %13 : vector<1x64x1xf32>
    %15 = arith.mulf %12, %12 : vector<1x64x1xf32>
    %16 = arith.subf %14, %15 : vector<1x64x1xf32>
    %cst_7 = arith.constant 9.99999974E-6 : f32
    %17 = vector.broadcast %cst_7 : f32 to vector<1x64x1xf32>
    %18 = arith.addf %16, %17 : vector<1x64x1xf32>
    %19 = math.rsqrt %18 : vector<1x64x1xf32>
    %c0_8 = arith.constant 0 : index
    %c0_9 = arith.constant 0 : index
    %20 = vector.load %arg2[%c0_8, %c0_9] : memref<64x2xf32, #tpu.memory_space<vmem>>, vector<64x2xf32>
    %21 = vector.extract_strided_slice %20 {offsets = [0, 0], sizes = [64, 1], strides = [1, 1]} : vector<64x2xf32> to vector<64x1xf32>
    %22 = vector.shape_cast %21 : vector<64x1xf32> to vector<1x64x1xf32>
    %23 = vector.extract_strided_slice %20 {offsets = [0, 1], sizes = [64, 1], strides = [1, 1]} : vector<64x2xf32> to vector<64x1xf32>
    %24 = vector.shape_cast %23 : vector<64x1xf32> to vector<1x64x1xf32>
    %25 = arith.mulf %22, %19 : vector<1x64x1xf32>
    %26 = arith.mulf %12, %25 : vector<1x64x1xf32>
    %27 = arith.subf %24, %26 : vector<1x64x1xf32>
    %28 = vector.broadcast %25 : vector<1x64x1xf32> to vector<2x64x128xf32>
    %29 = arith.mulf %1, %28 : vector<2x64x128xf32>
    %c0_10 = arith.constant 0 : index
    %c0_11 = arith.constant 0 : index
    %30 = vector.load %arg3[%c0_10, %c0_11] : memref<128x128xf32, #tpu.memory_space<vmem>>, vector<128x128xf32>
    %31 = vector.shape_cast %29 : vector<2x64x128xf32> to vector<128x128xf32>
    %cst_12 = arith.constant dense<0.000000e+00> : vector<128x128xf32>
    %32 = tpu.matmul %31, %30, %cst_12 {dimension_numbers = #tpu.dot_dimension_numbers<[1], [1], [0], [0], [0, 0, 1, 0], [], []>, precision = #tpu.contract_precision<fp32>} : vector<128x128xf32>, vector<128x128xf32>, vector<128x128xf32> -> vector<128x128xf32>
    %c0_13 = arith.constant 0 : index
    %c0_14 = arith.constant 0 : index
    %33 = vector.load %arg4[%c0_13, %c0_14] : memref<2x128xf32, #tpu.memory_space<vmem>>, vector<2x128xf32>
    %34 = vector.extract_strided_slice %33 {offsets = [0, 0], sizes = [1, 128], strides = [1, 1]} : vector<2x128xf32> to vector<1x128xf32>
    %35 = vector.extract_strided_slice %33 {offsets = [1, 0], sizes = [1, 128], strides = [1, 1]} : vector<2x128xf32> to vector<1x128xf32>
    %36 = vector.shape_cast %27 : vector<1x64x1xf32> to vector<64x1xf32>
    %37 = vector.broadcast %36 : vector<64x1xf32> to vector<64x128xf32>
    %38 = vector.broadcast %35 : vector<1x128xf32> to vector<64x128xf32>
    %39 = arith.mulf %37, %38 : vector<64x128xf32>
    %40 = vector.broadcast %34 : vector<1x128xf32> to vector<64x128xf32>
    %41 = arith.addf %39, %40 : vector<64x128xf32>
    %42 = vector.shape_cast %32 : vector<128x128xf32> to vector<2x64x128xf32>
    %43 = vector.shape_cast %41 : vector<64x128xf32> to vector<1x64x128xf32>
    %44 = vector.broadcast %43 : vector<1x64x128xf32> to vector<2x64x128xf32>
    %45 = arith.addf %42, %44 : vector<2x64x128xf32>
    %cst_15 = arith.constant 0.00999999977 : f32
    %46 = vector.broadcast %cst_15 : f32 to vector<2x64x128xf32>
    %47 = arith.mulf %46, %45 : vector<2x64x128xf32>
    %48 = arith.maximumf %45, %47 : vector<2x64x128xf32>
    %c0_16 = arith.constant 0 : index
    %c0_17 = arith.constant 0 : index
    %c0_18 = arith.constant 0 : index
    %49 = vector.load %arg5[%c0_16, %c0_17, %c0_18] : memref<2x64x128xf32, #tpu.memory_space<vmem>>, vector<2x64x128xf32>
    tpu.vector_store %arg5[%c0_16, %c0_17, %c0_18], %48 {strides = array<i32>} : memref<2x64x128xf32, #tpu.memory_space<vmem>>, vector<2x64x128xf32>,
    return
  }
  func.func @transform_0(%arg0: i32) -> (i32, i32, i32) {
    %c0_i32 = arith.constant 0 : i32
    %c0_i32_0 = arith.constant 0 : i32
    %c0_i32_1 = arith.constant 0 : i32
    return %c0_i32, %c0_i32_0, %arg0 : i32, i32, i32
  }
  func.func @transform_1(%arg0: i32) -> (i32, i32) {
    %c0_i32 = arith.constant 0 : i32
    %c0_i32_0 = arith.constant 0 : i32
    return %arg0, %c0_i32 : i32, i32
  }
  func.func @transform_2(%arg0: i32) -> (i32, i32) {
    %c0_i32 = arith.constant 0 : i32
    %c0_i32_0 = arith.constant 0 : i32
    %c0_i32_1 = arith.constant 0 : i32
    return %c0_i32, %c0_i32_0 : i32, i32
  }
  func.func @transform_3(%arg0: i32) -> (i32, i32) {
    %c0_i32 = arith.constant 0 : i32
    %c0_i32_0 = arith.constant 0 : i32
    %c0_i32_1 = arith.constant 0 : i32
    return %c0_i32, %c0_i32_0 : i32, i32
  }
  func.func @transform_4(%arg0: i32) -> (i32, i32, i32) {
    %c0_i32 = arith.constant 0 : i32
    %c0_i32_0 = arith.constant 0 : i32
    %c0_i32_1 = arith.constant 0 : i32
    return %c0_i32, %arg0, %c0_i32_0 : i32, i32, i32
  }
}

</mosaic_0001>

<bundles_post_ra>
// kernel: tpu_custom_call.1
= control target key start
LH: loop header
LB: loop body
LE: loop exit
PB: predicated region body
PF: predicated region fallthrough
CT: control target
= control target key end

     0   :  { %s3561_s0 = inlined_call_operand.vmem [shape: f32[2,128,64], index: 0, kind: input, shape index: {}]   ;;  %s3562_s1 = inlined_call_operand.vmem [shape: f32[64,2], index: 1, kind: input, shape index: {}]   ;;  %s3563_s2 = inlined_call_operand.vmem [shape: f32[128,128], index: 2, kind: input, shape index: {}]   ;;  %s3564_s3 = inlined_call_operand.vmem [shape: f32[2,128], index: 3, kind: input, shape index: {}]   ;;  %s3565_s4 = inlined_call_operand.hbm [shape: f32[2,64,128], index: 4, kind: output, shape index: {}]  }
   0x1   :  { %v34_v0 = vld [vmem:[%s3561_s0 + $0x80] sm:$0xff]  ;;  %v35_v2 = vld [vmem:[%s3561_s0 + $0x88] sm:$0xff]  ;;  %v36_v4 = vld [vmem:[%s3561_s0 + $0x90] sm:$0xff] }
   0x2   :  { %v18_v1 = vld [vmem:[%s3561_s0] sm:$0xff]  ;;  %82 = vxpose.xlu1.b32.start [1/16] (narrow) %v34_v0, 64  ;;  %v19_v3 = vld [vmem:[%s3561_s0 + $0x8] sm:$0xff]  ;;  %v20_v5 = vld [vmem:[%s3561_s0 + $0x10] sm:$0xff] }
   0x3   :  { %50 = vxpose.xlu0.b32.start [1/16] (narrow) %v18_v1, 64  ;;  %v37_v6 = vld [vmem:[%s3561_s0 + $0x98] sm:$0xff] }
   0x4   :  { %v21_v7 = vld [vmem:[%s3561_s0 + $0x18] sm:$0xff] }
   0x6   :  { %83 = vxpose.xlu1.b32.cont [2/16] (narrow) %v35_v2, 64 }
   0x7   :  { %51 = vxpose.xlu0.b32.cont [2/16] (narrow) %v19_v3, 64 }
   0xa   :  { %84 = vxpose.xlu1.b32.cont [3/16] (narrow) %v36_v4, 64 }
   0xb   :  { %52 = vxpose.xlu0.b32.cont [3/16] (narrow) %v20_v5, 64 }
   0xc   :  { %9 = vsyncpa [#allocation3], 0  ;;  %v38_v8 = vld [vmem:[%s3561_s0 + $0xa0] sm:$0xff]  ;;  %v39_v10 = vld [vmem:[%s3561_s0 + $0xa8] sm:$0xff]  ;;  %v2401_v53 = vmov 0   ;;  %s2403_s8 = smov 1  }
   0xd   :  { %v22_v9 = vld [vmem:[%s3561_s0 + $0x20] sm:$0xff]  ;;  %v23_v11 = vld [vmem:[%s3561_s0 + $0x28] sm:$0xff]  ;;  %v40_v12 = vld [vmem:[%s3561_s0 + $0xb0] sm:$0xff] }
   0xe   :  { %85 = vxpose.xlu1.b32.cont [4/16] (narrow) %v37_v6, 64  ;;  %v24_v13 = vld [vmem:[%s3561_s0 + $0x30] sm:$0xff]  ;;  %v41_v14 = vld [vmem:[%s3561_s0 + $0xb8] sm:$0xff]  ;;  %v42_v16 = vld [vmem:[%s3561_s0 + $0xc0] sm:$0xff] }
   0xf   :  { %53 = vxpose.xlu0.b32.cont [4/16] (narrow) %v21_v7, 64  ;;  %v25_v15 = vld [vmem:[%s3561_s0 + $0x38] sm:$0xff]  ;;  %v26_v17 = vld [vmem:[%s3561_s0 + $0x40] sm:$0xff]  ;;  %v43_v18 = vld [vmem:[%s3561_s0 + $0xc8] sm:$0xff] }
  0x10   :  { %v27_v19 = vld [vmem:[%s3561_s0 + $0x48] sm:$0xff]  ;;  %v44_v20 = vld [vmem:[%s3561_s0 + $0xd0] sm:$0xff]  ;;  %v45_v22 = vld [vmem:[%s3561_s0 + $0xd8] sm:$0xff] }
  0x11   :  { %v28_v21 = vld [vmem:[%s3561_s0 + $0x50] sm:$0xff]  ;;  %v29_v23 = vld [vmem:[%s3561_s0 + $0x58] sm:$0xff]  ;;  %v46_v24 = vld [vmem:[%s3561_s0 + $0xe0] sm:$0xff] }
  0x12   :  { %86 = vxpose.xlu1.b32.cont [5/16] (narrow) %v38_v8, 64  ;;  %v30_v25 = vld [vmem:[%s3561_s0 + $0x60] sm:$0xff]  ;;  %v47_v26 = vld [vmem:[%s3561_s0 + $0xe8] sm:$0xff]  ;;  %v48_v28 = vld [vmem:[%s3561_s0 + $0xf0] sm:$0xff] }
  0x13   :  { %54 = vxpose.xlu0.b32.cont [5/16] (narrow) %v22_v9, 64  ;;  %v31_v27 = vld [vmem:[%s3561_s0 + $0x68] sm:$0xff]  ;;  %v32_v29 = vld [vmem:[%s3561_s0 + $0x70] sm:$0xff]  ;;  %v49_v30 = vld [vmem:[%s3561_s0 + $0xf8] sm:$0xff] }
  0x14   :  { %v33_v31 = vld [vmem:[%s3561_s0 + $0x78] sm:$0xff]  ;;  %v392_v4 = vld [vmem:[%s3563_s2 + $0x70] sm:$0xff]  ;;  %v391_v9 = vld [vmem:[%s3563_s2 + $0x68] sm:$0xff] }
  0x15   :  { %v393_v1 = vld [vmem:[%s3563_s2 + $0x78] sm:$0xff]  ;;  %v2624_v6 = vand.u32 4294901760, %v392_v4 }
  0x16   :  { %87 = vxpose.xlu1.b32.cont [6/16] (narrow) %v39_v10, 64  ;;  %v2611_v2 = vand.u32 4294901760, %v393_v1 }
  0x17   :  { %55 = vxpose.xlu0.b32.cont [6/16] (narrow) %v23_v11, 64  ;;  %v2629_v8 = vsub.f32 %v392_v4, %v2624_v6 }
  0x18   :  { %v2614_v3 = vsub.f32 %v393_v1, %v2611_v2  ;;  %2017 = vmatprep.subr.mxu0 %v2611_v2 }
  0x19   :  { %2018 = vmatpush3.xpose.msra.mxu0 %v2611_v2  ;;  %v2637_v11 = vand.u32 4294901760, %v2629_v8 }
  0x1a   :  { %88 = vxpose.xlu1.b32.cont [7/16] (narrow) %v40_v12, 64  ;;  %v2622_v5 = vand.u32 4294901760, %v2614_v3  ;;  %2019 = vmatprep.subr.mxu0 %v2624_v6  ;;  %v2639_v12 = vand.u32 4294901760, %v391_v9 }
  0x1b   :  { %56 = vxpose.xlu0.b32.cont [7/16] (narrow) %v24_v13, 64  ;;  %3637 = vst [vmem:[#allocation8_spill] sm:$0xff] %v2637_v11  ;;  %v646_v13 = vsub.f32 %v2629_v8, %v2637_v11  ;;  %v378_v11 = vld [vmem:[%s3563_s2] sm:$0xff] }
  0x1c   :  { %3636 = vst [vmem:[#allocation7_spill] sm:$0xff] %v2622_v5  ;;  %v639_v7 = vsub.f32 %v2614_v3, %v2622_v5 }
  0x1d   :  { %2020 = vmatpush3.xpose.msra.mxu0 %v2624_v6 }
  0x1e   :  { %89 = vxpose.xlu1.b32.cont [8/16] (narrow) %v41_v14, 64  ;;  %v640_v10 = vand.u32 4294901760, %v639_v7  ;;  %v2644_v14 = vsub.f32 %v391_v9, %v2639_v12  ;;  %2021 = vmatprep.subr.mxu0 %v2639_v12  ;;  %v383_v7 = vld [vmem:[%s3563_s2 + $0x28] sm:$0xff] }
  0x1f   :  { %57 = vxpose.xlu0.b32.cont [8/16] (narrow) %v25_v15, 64  ;;  %v390_v15 = vld [vmem:[%s3563_s2 + $0x60] sm:$0xff] }
  0x20   :  { %2073 = vmatprep.subr.mxu1 %v640_v10 }
  0x21   :  { %2074 = vmatpush3.xpose.msra.mxu1 %v640_v10  ;;  %2022 = vmatpush3.xpose.msra.mxu0 %v2639_v12 }
  0x22   :  { %90 = vxpose.xlu1.b32.cont [9/16] (narrow) %v42_v16, 64  ;;  %v389_v16 = vld [vmem:[%s3563_s2 + $0x58] sm:$0xff] }
  0x23   :  { %58 = vxpose.xlu0.b32.cont [9/16] (narrow) %v26_v17, 64  ;;  %v388_v17 = vld [vmem:[%s3563_s2 + $0x50] sm:$0xff] }
  0x26   :  { %91 = vxpose.xlu1.b32.cont [10/16] (narrow) %v43_v18, 64  ;;  %v2656_v18 = vand.u32 4294901760, %v390_v15 }
  0x27   :  { %59 = vxpose.xlu0.b32.cont [10/16] (narrow) %v27_v19, 64  ;;  %v2658_v19 = vand.u32 4294901760, %v389_v16 }
  0x28   :  { %2023 = vmatprep.subr.mxu0 %v2656_v18 }
  0x29   :  { %2024 = vmatpush3.xpose.msra.mxu0 %v2656_v18 }
  0x2a   :  { %92 = vxpose.xlu1.b32.cont [11/16] (narrow) %v44_v20, 64  ;;  %v2661_v20 = vand.u32 4294901760, %v388_v17  ;;  %2025 = vmatprep.subr.mxu0 %v2658_v19 }
  0x2b   :  { %60 = vxpose.xlu0.b32.cont [11/16] (narrow) %v28_v21, 64  ;;  %v387_v21 = vld [vmem:[%s3563_s2 + $0x48] sm:$0xff] }
  0x2d   :  { %2026 = vmatpush3.xpose.msra.mxu0 %v2658_v19 }
  0x2e   :  { %93 = vxpose.xlu1.b32.cont [12/16] (narrow) %v45_v22, 64  ;;  %v647_v22 = vand.u32 4294901760, %v646_v13  ;;  %2027 = vmatprep.subr.mxu0 %v2661_v20 }
  0x2f   :  { %61 = vxpose.xlu0.b32.cont [12/16] (narrow) %v29_v23, 64  ;;  %v2667_v23 = vand.u32 4294901760, %v2644_v14 }
  0x30   :  { %2075 = vmatprep.subr.mxu1 %v647_v22 }
  0x31   :  { %3638 = vst [vmem:[#allocation9_spill] sm:$0xff] %v2667_v23  ;;  %2076 = vmatpush3.xpose.msra.mxu1 %v647_v22  ;;  %2028 = vmatpush3.xpose.msra.mxu0 %v2661_v20 }
  0x32   :  { %94 = vxpose.xlu1.b32.cont [13/16] (narrow) %v46_v24, 64  ;;  %v2669_v24 = vand.u32 4294901760, %v387_v21 }
  0x33   :  { %62 = vxpose.xlu0.b32.cont [13/16] (narrow) %v30_v25, 64  ;;  %v2672_v25 = vsub.f32 %v390_v15, %v2656_v18 }
  0x34   :  { %2029 = vmatprep.subr.mxu0 %v2669_v24 }
  0x35   :  { %2030 = vmatpush3.xpose.msra.mxu0 %v2669_v24 }
  0x36   :  { %95 = vxpose.xlu1.b32.cont [14/16] (narrow) %v47_v26, 64  ;;  %v2675_v26 = vsub.f32 %v389_v16, %v2658_v19  ;;  %v2749_v16 = vand.u32 4294901760, %v383_v7 }
  0x37   :  { %63 = vxpose.xlu0.b32.cont [14/16] (narrow) %v31_v27, 64  ;;  %v2679_v27 = vsub.f32 %v388_v17, %v2661_v20  ;;  %v382_v17 = vld [vmem:[%s3563_s2 + $0x20] sm:$0xff] }
  0x3a   :  { %96 = vxpose.xlu1.b32.cont [15/16] (narrow) %v48_v28, 64  ;;  %v386_v28 = vld [vmem:[%s3563_s2 + $0x40] sm:$0xff] }
  0x3b   :  { %64 = vxpose.xlu0.b32.cont [15/16] (narrow) %v32_v29, 64  ;;  %v653_v29 = vsub.f32 %v2644_v14, %v2667_v23 }
  0x3e   :  { %97 = vxpose.xlu1.b32.end [16/16] (narrow) %v49_v30, 64  ;;  %v2687_v30 = vand.u32 4294901760, %v2672_v25 }
  0x3f   :  { %65 = vxpose.xlu0.b32.end [16/16] (narrow) %v33_v31, 64  ;;  %v2690_v31 = vand.u32 4294901760, %v2675_v26 }
  0x40   :  { %3639 = vst [vmem:[#allocation10_spill] sm:$0xff] %v2687_v30 }
  0x41   :  { %3640 = vst [vmem:[#allocation11_spill] sm:$0xff] %v2690_v31 }
  0x5c   :  { %2360 = vset.pattern.permute.xlu1 %v2401_v53 }
  0x68   :  { %2359 = vset.pattern.permute.xlu0 %v2401_v53 }
  0x7e   :  { %v2528_v32 = vpop.trf.xlu1 }
  0x7f   :  { %v2530_v33 = vpop.trf.xlu0  ;;  %130 = vadd.xlane.f32.xlu1 %v2528_v32  ;;  %v154_v35 = vmul.f32 %v2528_v32, %v2528_v32 }
  0x80   :  { %114 = vadd.xlane.f32.xlu0 %v2530_v33  ;;  %v146_v34 = vmul.f32 %v2530_v33, %v2530_v33 }
  0x82   :  { %v2543_v38 = vpop.trf.xlu1 }
  0x83   :  { %v2538_v36 = vpop.trf.xlu0  ;;  %178 = vadd.xlane.f32.xlu1 %v154_v35  ;;  %v155_v41 = vmul.f32 %v2543_v38, %v2543_v38  ;;  %v2694_v35 = vand.u32 4294901760, %v2679_v27 }
  0x84   :  { %162 = vadd.xlane.f32.xlu0 %v146_v34  ;;  %v147_v37 = vmul.f32 %v2538_v36, %v2538_v36  ;;  %v654_v34 = vand.u32 4294901760, %v653_v29  ;;  %v2762_v29 = vsub.f32 %v383_v7, %v2749_v16 }
  0x85   :  { %3641 = vst [vmem:[#allocation12_spill] sm:$0xff] %v2694_v35  ;;  %v674_v53 = vsub.f32 %v2679_v27, %v2694_v35 }
  0x86   :  { %v2553_v42 = vpop.trf.xlu1  ;;  %2077 = vmatprep.subr.mxu1 %v654_v34 }
  0x87   :  { %116 = vadd.xlane.f32.xlu1 %v2538_v36  ;;  %v2545_v39 = vpop.trf.xlu0  ;;  %v156_v45 = vmul.f32 %v2553_v42, %v2553_v42  ;;  %2078 = vmatpush3.xpose.msra.mxu1 %v654_v34  ;;  %v2764_v34 = vand.u32 4294901760, %v382_v17 }
  0x88   :  { %164 = vadd.xlane.f32.xlu0 %v147_v37  ;;  %v148_v40 = vmul.f32 %v2545_v39, %v2545_v39  ;;  %v2698_v37 = vsub.f32 %v387_v21, %v2669_v24 }
  0x8a   :  { %v2563_v46 = vpop.trf.xlu1 }
  0x8b   :  { %132 = vadd.xlane.f32.xlu1 %v2543_v38  ;;  %v2555_v43 = vpop.trf.xlu0  ;;  %v157_v49 = vmul.f32 %v2563_v46, %v2563_v46 }
  0x8c   :  { %118 = vadd.xlane.f32.xlu0 %v2545_v39  ;;  %v149_v44 = vmul.f32 %v2555_v43, %v2555_v43 }
  0x8e   :  { %v2573_v50 = vpop.trf.xlu1 }
  0x8f   :  { %180 = vadd.xlane.f32.xlu1 %v155_v41  ;;  %v2565_v47 = vpop.trf.xlu0  ;;  %v158_v54 = vmul.f32 %v2573_v50, %v2573_v50  ;;  %v385_v41 = vld [vmem:[%s3563_s2 + $0x38] sm:$0xff] }
  0x90   :  { %166 = vadd.xlane.f32.xlu0 %v148_v40  ;;  %v150_v48 = vmul.f32 %v2565_v47, %v2565_v47  ;;  %v2700_v40 = vand.u32 4294901760, %v386_v28 }
  0x92   :  { %v2585_v56 = vpop.trf.xlu1  ;;  %2031 = vmatprep.subr.mxu0 %v2700_v40 }
  0x93   :  { %134 = vadd.xlane.f32.xlu1 %v2553_v42  ;;  %v2575_v51 = vpop.trf.xlu0  ;;  %v159_v58 = vmul.f32 %v2585_v56, %v2585_v56  ;;  %2032 = vmatpush3.xpose.msra.mxu0 %v2700_v40 }
  0x94   :  { %120 = vadd.xlane.f32.xlu0 %v2555_v43  ;;  %v151_v52 = vmul.f32 %v2575_v51, %v2575_v51 }
  0x96   :  { %v2593_v59 = vpop.trf.xlu1 }
  0x97   :  { %182 = vadd.xlane.f32.xlu1 %v156_v45  ;;  %v2583_v55 = vpop.trf.xlu0  ;;  %3634 = vst [vmem:[#allocation5_spill] sm:$0xff] %v2593_v59  ;;  %v160_v63 = vmul.f32 %v2593_v59, %v2593_v59  ;;  %v667_v45 = vsub.f32 %v2675_v26, %v2690_v31 }
  0x98   :  { %168 = vadd.xlane.f32.xlu0 %v149_v44  ;;  %v152_v60 = vmul.f32 %v2583_v55, %v2583_v55  ;;  %v660_v44 = vsub.f32 %v2672_v25, %v2687_v30 }
  0x9a   :  { %v2601_v62 = vpop.trf.xlu1 }
  0x9b   :  { %136 = vadd.xlane.f32.xlu1 %v2563_v46  ;;  %v2589_v57 = vpop.trf.xlu0  ;;  %3635 = vst [vmem:[#allocation6_spill] sm:$0xff] %v2601_v62  ;;  %v161_v0 = vmul.f32 %v2601_v62, %v2601_v62 }
  0x9c   :  { %122 = vadd.xlane.f32.xlu0 %v2565_v47  ;;  %v153_v61 = vmul.f32 %v2589_v57, %v2589_v57 }
  0x9f   :  { %184 = vadd.xlane.f32.xlu1 %v157_v49  ;;  %v2710_v49 = vand.u32 4294901760, %v385_v41 }
  0xa0   :  { %170 = vadd.xlane.f32.xlu0 %v150_v48  ;;  %v661_v48 = vand.u32 4294901760, %v660_v44 }
  0xa1   :  { %v2734_v4 = vsub.f32 %v385_v41, %v2710_v49  ;;  %2033 = vmatprep.subr.mxu0 %v2710_v49 }
  0xa2   :  { %2079 = vmatprep.subr.mxu1 %v661_v48  ;;  %2034 = vmatpush3.xpose.msra.mxu0 %v2710_v49 }
  0xa3   :  { %138 = vadd.xlane.f32.xlu1 %v2573_v50  ;;  %2080 = vmatpush3.xpose.msra.mxu1 %v661_v48  ;;  %v2746_v15 = vand.u32 4294901760, %v2734_v4 }
  0xa4   :  { %124 = vadd.xlane.f32.xlu0 %v2575_v51 }
  0xa5   :  { %3644 = vst [vmem:[#allocation15_spill] sm:$0xff] %v2746_v15 }
  0xa7   :  { %186 = vadd.xlane.f32.xlu1 %v158_v54  ;;  %v2715_v54 = vand.u32 4294901760, %v2698_v37 }
  0xa8   :  { %172 = vadd.xlane.f32.xlu0 %v151_v52  ;;  %v668_v52 = vand.u32 4294901760, %v667_v45 }
  0xa9   :  { %3642 = vst [vmem:[#allocation13_spill] sm:$0xff] %v2715_v54 }
  0xaa   :  { %2081 = vmatprep.subr.mxu1 %v668_v52 }
  0xab   :  { %140 = vadd.xlane.f32.xlu1 %v2585_v56  ;;  %2082 = vmatpush3.xpose.msra.mxu1 %v668_v52 }
  0xac   :  { %126 = vadd.xlane.f32.xlu0 %v2583_v55 }
  0xaf   :  { %188 = vadd.xlane.f32.xlu1 %v159_v58  ;;  %v2719_v58 = vsub.f32 %v386_v28, %v2700_v40  ;;  %v695_v28 = vsub.f32 %v2734_v4, %v2746_v15 }
  0xb0   :  { %128 = vadd.xlane.f32.xlu0 %v2589_v57 }
  0xb1   :  { %v2730_v1 = vand.u32 4294901760, %v2719_v58 }
  0xb3   :  { %142 = vadd.xlane.f32.xlu1 %v2593_v59  ;;  %3643 = vst [vmem:[#allocation14_spill] sm:$0xff] %v2730_v1  ;;  %v688_v13 = vsub.f32 %v2719_v58, %v2730_v1  ;;  %v2897_v59 = vld [vmem:[%s3562_s1 + $0x18] sm:$0xff] }
  0xb4   :  { %174 = vadd.xlane.f32.xlu0 %v152_v60  ;;  %v384_v60 = vld [vmem:[%s3563_s2 + $0x30] sm:$0xff]  ;;  %3662 = vst [vmem:[#allocation33_spill] sm:$0xff] %v2897_v59 }
  0xb5   :  { %v689_v22 = vand.u32 4294901760, %v688_v13 }
  0xb7   :  { %144 = vadd.xlane.f32.xlu1 %v2601_v62 }
  0xb8   :  { %176 = vadd.xlane.f32.xlu0 %v153_v61  ;;  %v2725_v61 = vand.u32 4294901760, %v384_v60 }
  0xba   :  { %v2741_v9 = vsub.f32 %v384_v60, %v2725_v61  ;;  %v2772_v60 = vand.u32 4294901760, %v2762_v29  ;;  %2035 = vmatprep.subr.mxu0 %v2725_v61 }
  0xbb   :  { %190 = vadd.xlane.f32.xlu1 %v160_v63  ;;  %v675_v63 = vand.u32 4294901760, %v674_v53  ;;  %v696_v53 = vand.u32 4294901760, %v695_v28  ;;  %2036 = vmatpush3.xpose.msra.mxu0 %v2725_v61 }
  0xbc   :  { %v2755_v21 = vand.u32 4294901760, %v2741_v9  ;;  %3646 = vst [vmem:[#allocation17_spill] sm:$0xff] %v2772_v60  ;;  %v709_v28 = vsub.f32 %v2762_v29, %v2772_v60  ;;  %2037 = vmatprep.subr.mxu0 %v2749_v16 }
  0xbd   :  { %2083 = vmatprep.subr.mxu1 %v675_v63 }
  0xbe   :  { %2084 = vmatpush3.xpose.msra.mxu1 %v675_v63  ;;  %3645 = vst [vmem:[#allocation16_spill] sm:$0xff] %v2755_v21  ;;  %v702_v48 = vsub.f32 %v2741_v9, %v2755_v21  ;;  %v2776_v63 = vsub.f32 %v382_v17, %v2764_v34 }
  0xbf   :  { %192 = vadd.xlane.f32.xlu1 %v161_v0  ;;  %v681_v0 = vsub.f32 %v2698_v37, %v2715_v54  ;;  %2038 = vmatpush3.xpose.msra.mxu0 %v2749_v16 }
  0xc0   :  { %3647 = vst [vmem:[#allocation18_spill] sm:$0xff] %v2776_v63  ;;  %v703_v13 = vand.u32 4294901760, %v702_v48  ;;  %v710_v48 = vand.u32 4294901760, %v709_v28  ;;  %2039 = vmatprep.subr.mxu0 %v2764_v34 }
  0xc1   :  { %v682_v10 = vand.u32 4294901760, %v681_v0 }
  0xc3   :  { %2085 = vmatprep.subr.mxu1 %v682_v10  ;;  %2040 = vmatpush3.xpose.msra.mxu0 %v2764_v34 }
  0xc4   :  { %2086 = vmatpush3.xpose.msra.mxu1 %v682_v10 }
  0xc5   :  { %2087 = vmatprep.subr.mxu1 %v689_v22 }
  0xc8   :  { %2088 = vmatpush3.xpose.msra.mxu1 %v689_v22 }
  0xc9   :  { %2089 = vmatprep.subr.mxu1 %v696_v53 }
  0xcc   :  { %2090 = vmatpush3.xpose.msra.mxu1 %v696_v53 }
  0xcd   :  { %2091 = vmatprep.subr.mxu1 %v703_v13 }
  0xd0   :  { %2092 = vmatpush3.xpose.msra.mxu1 %v703_v13  ;;  %v380_v13 = vld [vmem:[%s3563_s2 + $0x10] sm:$0xff] }
  0xd1   :  { %2093 = vmatprep.subr.mxu1 %v710_v48 }
  0xd4   :  { %2094 = vmatpush3.xpose.msra.mxu1 %v710_v48 }
 0x108   :  { %v131_v41 = vpop.xlane.xlu1 %130 }
 0x109   :  { %v115_v44 = vpop.xlane.xlu0 %114 }
 0x10a   :  { %v194_v45 = vadd.f32 %v131_v41, %v115_v44 }
 0x10c   :  { %v2769_v52 = vmul.f32 0.00390625, %v194_v45  ;;  %v179_v0 = vpop.xlane.xlu1 %178  ;;  %v2784_v45 = vand.u32 4294901760, %v2776_v63 }
 0x10d   :  { %v163_v7 = vpop.xlane.xlu0 %162 }
 0x10e   :  { %v202_v10 = vadd.f32 %v179_v0, %v163_v7  ;;  %v226_v41 = vmul.f32 %v2769_v52, %v2769_v52  ;;  %3648 = vst [vmem:[#allocation19_spill] sm:$0xff] %v2784_v45  ;;  %v716_v7 = vsub.f32 %v2776_v63, %v2784_v45 }
 0x110   :  { %v218_v44 = vmul.f32 0.00390625, %v202_v10  ;;  %v117_v17 = vpop.xlane.xlu1 %116 }
 0x111   :  { %v165_v21 = vpop.xlane.xlu0 %164 }
 0x112   :  { %v234_v0 = vsub.f32 %v218_v44, %v226_v41  ;;  %v381_v41 = vld [vmem:[%s3563_s2 + $0x18] sm:$0xff]  ;;  %v717_v44 = vand.u32 4294901760, %v716_v7 }
 0x113   :  { %v2797_v28 = vand.u32 4294901760, %v381_v41 }
 0x114   :  { %v242_v22 = vadd.f32 1e-05, %v234_v0  ;;  %v133_v10 = vpop.xlane.xlu1 %132  ;;  %2095 = vmatprep.subr.mxu1 %v717_v44 }
 0x115   :  { %v119_v60 = vpop.xlane.xlu0 %118  ;;  %v195_v15 = vadd.f32 %v133_v10, %v117_v17  ;;  %v2800_v54 = vsub.f32 %v381_v41, %v2797_v28  ;;  %2041 = vmatprep.subr.mxu0 %v2797_v28  ;;  %2096 = vmatpush3.xpose.msra.mxu1 %v717_v44 }
 0x116   :  { %2363 = vrsqrt.f32 %v242_v22  ;;  %2042 = vmatpush3.xpose.msra.mxu0 %v2797_v28 }
 0x117   :  { %v2795_v53 = vmul.f32 0.00390625, %v195_v15  ;;  %3649 = vst [vmem:[#allocation20_spill] sm:$0xff] %v2800_v54  ;;  %v2810_v22 = vand.u32 4294901760, %v2800_v54 }
 0x118   :  { %v181_v0 = vpop.xlane.xlu1 %180 }
 0x119   :  { %v167_v45 = vpop.xlane.xlu0 %166  ;;  %v203_v1 = vadd.f32 %v181_v0, %v165_v21  ;;  %v227_v15 = vmul.f32 %v2795_v53, %v2795_v53  ;;  %3650 = vst [vmem:[#allocation21_spill] sm:$0xff] %v2810_v22  ;;  %v2812_v21 = vand.u32 4294901760, %v380_v13  ;;  %v723_v0 = vsub.f32 %v2800_v54, %v2810_v22 }
 0x11b   :  { %v219_v17 = vmul.f32 0.00390625, %v203_v1  ;;  %3651 = vst [vmem:[#allocation22_spill] sm:$0xff] %v2812_v21  ;;  %v2817_v35 = vsub.f32 %v380_v13, %v2812_v21  ;;  %2043 = vmatprep.subr.mxu0 %v2812_v21  ;;  %v379_v1 = vld [vmem:[%s3563_s2 + $0x8] sm:$0xff]  ;;  %v2832_v13 = vld [vmem:[%s3562_s1] sm:$0xff] }
 0x11c   :  { %v135_v7 = vpop.xlane.xlu1 %134  ;;  %2044 = vmatpush3.xpose.msra.mxu0 %v2812_v21  ;;  %3654 = vst [vmem:[#allocation25_spill] sm:$0xff] %v2832_v13  ;;  %v2834_v44 = vand.u32 4294901760, %v379_v1 }
 0x11d   :  { %v121_v10 = vpop.xlane.xlu0 %120  ;;  %v235_v41 = vsub.f32 %v219_v17, %v227_v15  ;;  %v196_v48 = vadd.f32 %v135_v7, %v119_v60  ;;  %3652 = vst [vmem:[#allocation23_spill] sm:$0xff] %v2817_v35  ;;  %v724_v15 = vand.u32 4294901760, %v723_v0  ;;  %v2827_v60 = vand.u32 4294901760, %v2817_v35 }
 0x11e   :  { %3655 = vst [vmem:[#allocation26_spill] sm:$0xff] %v2834_v44  ;;  %v2841_v23 = vsub.f32 %v379_v1, %v2834_v44  ;;  %2045 = vmatprep.subr.mxu0 %v2834_v44 }
 0x11f   :  { %v243_v31 = vadd.f32 1e-05, %v235_v41  ;;  %v2824_v30 = vmul.f32 0.00390625, %v196_v48  ;;  %3653 = vst [vmem:[#allocation24_spill] sm:$0xff] %v2827_v60  ;;  %2097 = vmatprep.subr.mxu1 %v724_v15  ;;  %v730_v41 = vsub.f32 %v2817_v35, %v2827_v60  ;;  %v2850_v60 = vand.u32 4294901760, %v378_v11 }
 0x120   :  { %v183_v17 = vpop.xlane.xlu1 %182  ;;  %2098 = vmatpush3.xpose.msra.mxu1 %v724_v15  ;;  %3656 = vst [vmem:[#allocation27_spill] sm:$0xff] %v2841_v23  ;;  %2046 = vmatpush3.xpose.msra.mxu0 %v2834_v44  ;;  %v2854_v1 = vand.u32 4294901760, %v2841_v23 }
 0x121   :  { %v169_v7 = vpop.xlane.xlu0 %168  ;;  %2365 = vrsqrt.f32 %v243_v31  ;;  %v204_v22 = vadd.f32 %v183_v17, %v167_v45  ;;  %v228_v0 = vmul.f32 %v2824_v30, %v2824_v30  ;;  %v731_v17 = vand.u32 4294901760, %v730_v41  ;;  %3657 = vst [vmem:[#allocation28_spill] sm:$0xff] %v2850_v60  ;;  %2047 = vmatprep.subr.mxu0 %v2850_v60 }
 0x122   :  { %3658 = vst [vmem:[#allocation29_spill] sm:$0xff] %v2854_v1  ;;  %v2860_v41 = vsub.f32 %v378_v11, %v2850_v60 }
 0x123   :  { %v2364_v48 = vpop.eup %2363  ;;  %v220_v31 = vmul.f32 0.00390625, %v204_v22  ;;  %2099 = vmatprep.subr.mxu1 %v731_v17  ;;  %v737_v22 = vsub.f32 %v2841_v23, %v2854_v1  ;;  %v2878_v23 = vld [vmem:[%s3562_s1 + $0x8] sm:$0xff] }
 0x124   :  { %v2848_v45 = vmul.f32 %v2364_v48, %v2832_v13  ;;  %v137_v5 = vpop.xlane.xlu1 %136  ;;  %2100 = vmatpush3.xpose.msra.mxu1 %v731_v17  ;;  %3659 = vst [vmem:[#allocation30_spill] sm:$0xff] %v2860_v41  ;;  %2048 = vmatpush3.xpose.msra.mxu0 %v2850_v60  ;;  %v3606_v17 = vmov 1  }
 0x125   :  { %v123_v15 = vpop.xlane.xlu0 %122  ;;  %v236_v35 = vsub.f32 %v220_v31, %v228_v0  ;;  %v197_v54 = vadd.f32 %v137_v5, %v121_v10  ;;  %v738_v5 = vand.u32 4294901760, %v737_v22  ;;  %v2867_v10 = vand.u32 4294901760, %v2860_v41  ;;  %2129 = vmatprep.subr.mxu0 %v2614_v3 }
 0x126   :  { %324 = vperm.xlu0 %2359, %v2848_v45  }
 0x127   :  { %v244_v48 = vadd.f32 1e-05, %v236_v35  ;;  %v2863_v44 = vmul.f32 0.00390625, %v197_v54  ;;  %3660 = vst [vmem:[#allocation31_spill] sm:$0xff] %v2867_v10  ;;  %2101 = vmatprep.subr.mxu1 %v738_v5  ;;  %v744_v11 = vsub.f32 %v2860_v41, %v2867_v10 }
 0x128   :  { %v185_v21 = vpop.xlane.xlu1 %184  ;;  %2102 = vmatpush3.xpose.msra.mxu1 %v738_v5 }
 0x129   :  { %v171_v0 = vpop.xlane.xlu0 %170  ;;  %2367 = vrsqrt.f32 %v244_v48  ;;  %v205_v31 = vadd.f32 %v185_v21, %v169_v7  ;;  %v229_v35 = vmul.f32 %v2863_v44, %v2863_v44  ;;  %v745_v21 = vand.u32 4294901760, %v744_v11 }
 0x12a   :  { %2362 = vset.pattern.permute.xlu0 %v3606_v17 }
 0x12b   :  { %v221_v54 = vmul.f32 0.00390625, %v205_v31  ;;  %2103 = vmatprep.subr.mxu1 %v745_v21 }
 0x12c   :  { %v139_v22 = vpop.xlane.xlu1 %138  ;;  %2104 = vmatpush3.xpose.msra.mxu1 %v745_v21 }
 0x12d   :  { %v125_v1 = vpop.xlane.xlu0 %124  ;;  %v237_v7 = vsub.f32 %v221_v54, %v229_v35  ;;  %v198_v48 = vadd.f32 %v139_v22, %v123_v15  ;;  %2185 = vmatprep.subr.mxu1 %v2611_v2 }
 0x12e   :  { %v2366_v17 = vpop.eup %2365 }
 0x12f   :  { %v245_v60 = vadd.f32 1e-05, %v237_v7  ;;  %v2880_v63 = vmul.f32 0.00390625, %v198_v48  ;;  %v267_v10 = vmul.f32 %v2366_v17, %v2878_v23  ;;  %v2891_v17 = vld [vmem:[%s3562_s1 + $0x10] sm:$0xff] }
 0x130   :  { %v187_v31 = vpop.xlane.xlu1 %186  ;;  %3661 = vst [vmem:[#allocation32_spill] sm:$0xff] %v2891_v17 }
 0x131   :  { %v173_v5 = vpop.xlane.xlu0 %172  ;;  %2369 = vrsqrt.f32 %v245_v60  ;;  %v206_v41 = vadd.f32 %v187_v31, %v171_v0  ;;  %329 = vperm.xlu1 %2360, %v267_v10   ;;  %v275_v62 = vmul.f32 %v267_v10, %v2795_v53  ;;  %v230_v15 = vmul.f32 %v2880_v63, %v2880_v63 }
 0x133   :  { %v222_v11 = vmul.f32 0.00390625, %v206_v41  ;;  %292 = vrot.lane.b32.xlu0 %v275_v62, %s2403_s8 }
 0x134   :  { %v141_v35 = vpop.xlane.xlu1 %140 }
 0x135   :  { %v238_v54 = vsub.f32 %v222_v11, %v230_v15  ;;  %v199_v22 = vadd.f32 %v141_v35, %v125_v1  ;;  %v127_v0 = vpop.xlane.xlu0 %126 }
 0x136   :  { %v2368_v60 = vpop.eup %2367 }
 0x137   :  { %v246_v21 = vadd.f32 1e-05, %v238_v54  ;;  %v215_v7 = vmul.f32 0.00390625, %v199_v22  ;;  %v268_v53 = vmul.f32 %v2368_v60, %v2891_v17  ;;  %v2911_v17 = vld [vmem:[%s3562_s1 + $0x28] sm:$0xff] }
 0x138   :  { %v189_v10 = vpop.xlane.xlu1 %188 }
 0x139   :  { %2371 = vrsqrt.f32 %v246_v21  ;;  %v207_v41 = vadd.f32 %v189_v10, %v173_v5  ;;  %334 = vperm.xlu1 %2360, %v268_v53   ;;  %v231_v48 = vmul.f32 %v215_v7, %v215_v7  ;;  %v129_v31 = vpop.xlane.xlu0 %128 }
 0x13b   :  { %v223_v62 = vmul.f32 0.00390625, %v207_v41 }
 0x13c   :  { %v143_v13 = vpop.xlane.xlu1 %142 }
 0x13d   :  { %v239_v1 = vsub.f32 %v223_v62, %v231_v48  ;;  %v200_v35 = vadd.f32 %v143_v13, %v127_v0  ;;  %v175_v60 = vpop.xlane.xlu0 %174  ;;  %v2905_v48 = vld [vmem:[%s3562_s1 + $0x20] sm:$0xff] }
 0x13e   :  { %v2370_v15 = vpop.eup %2369 }
 0x13f   :  { %v247_v11 = vadd.f32 1e-05, %v239_v1  ;;  %v269_v54 = vmul.f32 %v2370_v15, %v2897_v59  ;;  %v216_v21 = vmul.f32 0.00390625, %v200_v35 }
 0x140   :  { %v145_v22 = vpop.xlane.xlu1 %144 }
 0x141   :  { %2373 = vrsqrt.f32 %v247_v11  ;;  %339 = vperm.xlu1 %2360, %v269_v54   ;;  %v277_v5 = vmul.f32 %v269_v54, %v2863_v44  ;;  %v201_v10 = vadd.f32 %v145_v22, %v129_v31  ;;  %v232_v0 = vmul.f32 %v216_v21, %v216_v21  ;;  %v177_v59 = vpop.xlane.xlu0 %176 }
 0x143   :  { %296 = vrot.lane.b32.xlu0 %v277_v5, %s2403_s8  ;;  %v217_v1 = vmul.f32 0.00390625, %v201_v10 }
 0x144   :  { %v191_v41 = vpop.xlane.xlu1 %190 }
 0x145   :  { %v208_v62 = vadd.f32 %v191_v41, %v175_v60  ;;  %v233_v31 = vmul.f32 %v217_v1, %v217_v1 }
 0x146   :  { %v2372_v13 = vpop.eup %2371 }
 0x147   :  { %v224_v15 = vmul.f32 0.00390625, %v208_v62  ;;  %v270_v11 = vmul.f32 %v2372_v13, %v2905_v48 }
 0x148   :  { %v193_v44 = vpop.xlane.xlu1 %192 }
 0x149   :  { %v240_v54 = vsub.f32 %v224_v15, %v232_v0  ;;  %v209_v35 = vadd.f32 %v193_v44, %v177_v59  ;;  %344 = vperm.xlu1 %2360, %v270_v11   ;;  %v2918_v59 = vld [vmem:[%s3562_s1 + $0x30] sm:$0xff]  ;;  %v2924_v44 = vld [vmem:[%s3562_s1 + $0x38] sm:$0xff] }
 0x14b   :  { %v248_v22 = vadd.f32 1e-05, %v240_v54  ;;  %v225_v5 = vmul.f32 0.00390625, %v209_v35 }
 0x14d   :  { %2375 = vrsqrt.f32 %v248_v22  ;;  %v241_v60 = vsub.f32 %v225_v5, %v233_v31  ;;  %v274_v31 = vmul.f32 %v2848_v45, %v2769_v52  ;;  %v3663_v22 = vmov 1  }
 0x14e   :  { %v2374_v41 = vpop.eup %2373  ;;  %v276_v5 = vmul.f32 %v268_v53, %v2824_v30 }
 0x14f   :  { %v249_v10 = vadd.f32 1e-05, %v241_v60  ;;  %v271_v62 = vmul.f32 %v2374_v41, %v2911_v17  ;;  %v278_v60 = vmul.f32 %v270_v11, %v2880_v63 }
 0x151   :  { %2377 = vrsqrt.f32 %v249_v10  ;;  %349 = vperm.xlu1 %2360, %v271_v62   ;;  %v279_v13 = vmul.f32 %v271_v62, %v215_v7 }
 0x153   :  { %300 = vrot.lane.b32.xlu0 %v279_v13, %s2403_s8 }
 0x15a   :  { %v2376_v0 = vpop.eup %2375 }
 0x15b   :  { %v272_v15 = vmul.f32 %v2376_v0, %v2918_v59 }
 0x15d   :  { %354 = vperm.xlu1 %2360, %v272_v15   ;;  %v280_v41 = vmul.f32 %v272_v15, %v216_v21 }
 0x15e   :  { %v2378_v54 = vpop.eup %2377 }
 0x15f   :  { %v273_v35 = vmul.f32 %v2378_v54, %v2924_v44 }
 0x161   :  { %359 = vperm.xlu1 %2360, %v273_v35   ;;  %v281_v7 = vmul.f32 %v273_v35, %v217_v1 }
 0x163   :  { %304 = vrot.lane.b32.xlu0 %v281_v7, %s2403_s8 }
 0x165   :  { %290 = vrot.lane.b32.xlu1 %v274_v31, %s2403_s8 }
 0x166   :  { %2361 = vset.pattern.permute.xlu1 %v3663_v22 }
 0x169   :  { %294 = vrot.lane.b32.xlu1 %v276_v5, %s2403_s8 }
 0x16d   :  { %298 = vrot.lane.b32.xlu1 %v278_v60, %s2403_s8 }
 0x171   :  { %302 = vrot.lane.b32.xlu1 %v280_v41, %s2403_s8 }
 0x1a1   :  { %v2937_v1 = vpop.permute.xlu0 %324 }
 0x1a2   :  { %v362_v52 = vmul.f32 %v2937_v1, %v2530_v33 }
 0x1a4   :  { %v2941_v45 = vand.u32 4294901760, %v362_v52 }
 0x1a5   :  { %v293_v30 = vpop.permute.xlu0 %292 }
 0x1a6   :  { %v2944_v10 = vsub.f32 %v362_v52, %v2941_v45  ;;  %2105 = vmatprep.mubr.f32.mxu1 %v2941_v45  ;;  %v315_v63 = vsub.f32 %v2878_v23, %v293_v30 }
 0x1a8   :  { %v3628_v53 = vand.u32 4294901760, %v2944_v10  ;;  %1688 = vperm.xlu0 %2362, %v315_v63  }
 0x1aa   :  { %v478_v21 = vsub.f32 %v2944_v10, %v3628_v53  ;;  %v3672_v53 = vld [vmem:[#allocation20_spill] sm:$0xff] }
 0x1ac   :  { %v479_v11 = vand.u32 4294901760, %v478_v21  ;;  %v2952_v62 = vpop.permute.xlu1 %329 }
 0x1ad   :  { %v363_v33 = vmul.f32 %v2952_v62, %v2538_v36 }
 0x1ae   :  { %2049 = vmatprep.mubr.f32.mxu0 %v479_v11 }
 0x1af   :  { %v2956_v13 = vand.u32 4294901760, %v363_v33 }
 0x1b1   :  { %v2959_v0 = vsub.f32 %v363_v33, %v2956_v13  ;;  %2106 = vmatmul.mubr.f32.vlgmr.msra.gmra.mxu1 %v2956_v13 }
 0x1b2   :  { %2186 = vmatpush3.xpose.msra.mxu1 %v2611_v2 }
 0x1b3   :  { %2187 = vmatprep.subr.mxu1 %v2624_v6  ;;  %v3627_v23 = vand.u32 4294901760, %v2959_v0 }
 0x1b4   :  { %v2965_v15 = vpop.permute.xlu1 %334 }
 0x1b5   :  { %v364_v54 = vmul.f32 %v2965_v15, %v2545_v39  ;;  %v488_v36 = vsub.f32 %v2959_v0, %v3627_v23 }
 0x1b6   :  { %2188 = vmatpush3.xpose.msra.mxu1 %v2624_v6 }
 0x1b7   :  { %v2973_v35 = vand.u32 4294901760, %v364_v54  ;;  %v489_v7 = vand.u32 4294901760, %v488_v36  ;;  %2189 = vmatprep.subr.mxu1 %v2639_v12 }
 0x1b9   :  { %v2977_v31 = vsub.f32 %v364_v54, %v2973_v35  ;;  %2050 = vmatmul.mubr.f32.vlgmr.msra.gmra.mxu0 %v489_v7  ;;  %2108 = vmatprep.mubr.f32.mxu1 %v2973_v35 }
 0x1ba   :  { %2130 = vmatpush3.xpose.msra.mxu0 %v2614_v3  ;;  %2190 = vmatpush3.xpose.msra.mxu1 %v2639_v12 }
 0x1bb   :  { %2131 = vmatprep.subr.mxu0 %v2629_v8  ;;  %2191 = vmatprep.subr.mxu1 %v2656_v18  ;;  %v3624_v39 = vand.u32 4294901760, %v2977_v31 }
 0x1bc   :  { %v2985_v22 = vpop.permute.xlu1 %339 }
 0x1bd   :  { %v365_v5 = vmul.f32 %v2985_v22, %v2555_v43  ;;  %v498_v60 = vsub.f32 %v2977_v31, %v3624_v39  ;;  %v297_v39 = vpop.permute.xlu0 %296 }
 0x1be   :  { %2132 = vmatpush3.xpose.msra.mxu0 %v2629_v8  ;;  %2192 = vmatpush3.xpose.msra.mxu1 %v2656_v18 }
 0x1bf   :  { %v2994_v3 = vand.u32 4294901760, %v365_v5  ;;  %v499_v41 = vand.u32 4294901760, %v498_v60  ;;  %2133 = vmatprep.subr.mxu0 %v2644_v14  ;;  %2193 = vmatprep.subr.mxu1 %v2658_v19  ;;  %v371_v60 = vmul.f32 %v2952_v62, %v2543_v38  ;;  %v373_v38 = vmul.f32 %v2985_v22, %v2563_v46 }
 0x1c1   :  { %v2999_v52 = vsub.f32 %v365_v5, %v2994_v3  ;;  %2052 = vmatprep.mubr.f32.mxu0 %v499_v41  ;;  %2109 = vmatmul.mubr.f32.gmra.mxu1 %v2994_v3 }
 0x1c2   :  { %2134 = vmatpush3.xpose.msra.mxu0 %v2644_v14  ;;  %2194 = vmatpush3.xpose.msra.mxu1 %v2658_v19 }
 0x1c3   :  { %2135 = vmatprep.subr.mxu0 %v2672_v25  ;;  %2195 = vmatprep.subr.mxu1 %v2661_v20  ;;  %v3623_v43 = vand.u32 4294901760, %v2999_v52 }
 0x1c4   :  { %v345_v8 = vpop.permute.xlu1 %344 }
 0x1c5   :  { %v366_v30 = vmul.f32 %v345_v8, %v2565_v47  ;;  %v508_v63 = vsub.f32 %v2999_v52, %v3623_v43  ;;  %v374_v62 = vmul.f32 %v345_v8, %v2573_v50 }
 0x1c6   :  { %2136 = vmatpush3.xpose.msra.mxu0 %v2672_v25  ;;  %2196 = vmatpush3.xpose.msra.mxu1 %v2661_v20 }
 0x1c7   :  { %v3013_v14 = vand.u32 4294901760, %v366_v30  ;;  %v509_v21 = vand.u32 4294901760, %v508_v63  ;;  %2137 = vmatprep.subr.mxu0 %v2675_v26  ;;  %2197 = vmatprep.subr.mxu1 %v2669_v24  ;;  %v3061_v63 = vand.u32 4294901760, %v371_v60 }
 0x1c9   :  { %v3018_v11 = vsub.f32 %v366_v30, %v3013_v14  ;;  %2053 = vmatmul.mubr.f32.gmra.mxu0 %v509_v21  ;;  %2111 = vmatprep.mubr.f32.mxu1 %v3013_v14  ;;  %3664 = vst [vmem:[#allocation34_spill] sm:$0xff] %v3061_v63  ;;  %v3083_v22 = vsub.f32 %v371_v60, %v3061_v63  ;;  %v3085_v21 = vand.u32 4294901760, %v373_v38 }
 0x1ca   :  { %2138 = vmatpush3.xpose.msra.mxu0 %v2675_v26  ;;  %2198 = vmatpush3.xpose.msra.mxu1 %v2669_v24 }
 0x1cb   :  { %2139 = vmatprep.subr.mxu0 %v2679_v27  ;;  %2199 = vmatprep.subr.mxu1 %v2700_v40  ;;  %v3622_v47 = vand.u32 4294901760, %v3018_v11 }
 0x1cc   :  { %v350_v25 = vpop.permute.xlu1 %349 }
 0x1cd   :  { %v367_v33 = vmul.f32 %v350_v25, %v2575_v51  ;;  %v518_v54 = vsub.f32 %v3018_v11, %v3622_v47 }
 0x1ce   :  { %2140 = vmatpush3.xpose.msra.mxu0 %v2679_v27  ;;  %2200 = vmatpush3.xpose.msra.mxu1 %v2700_v40  ;;  %v370_v27 = vmul.f32 %v2937_v1, %v2528_v32  ;;  %v372_v32 = vmul.f32 %v2965_v15, %v2553_v42 }
 0x1cf   :  { %v3032_v26 = vand.u32 4294901760, %v367_v33  ;;  %v519_v36 = vand.u32 4294901760, %v518_v54  ;;  %2141 = vmatprep.subr.mxu0 %v2698_v37  ;;  %2201 = vmatprep.subr.mxu1 %v2710_v49  ;;  %v3098_v54 = vand.u32 4294901760, %v374_v62 }
 0x1d0   :  { %v3056_v41 = vand.u32 4294901760, %v370_v27 }
 0x1d1   :  { %v3037_v7 = vsub.f32 %v367_v33, %v3032_v26  ;;  %2055 = vmatprep.mubr.f32.mxu0 %v519_v36  ;;  %2112 = vmatmul.mubr.f32.gmra.mxu1 %v3032_v26  ;;  %v375_v33 = vmul.f32 %v350_v25, %v2585_v56  ;;  %v3667_v25 = vld [vmem:[#allocation25_spill] sm:$0xff]  ;;  %v3128_v43 = vsub.f32 %v374_v62, %v3098_v54 }
 0x1d2   :  { %2142 = vmatpush3.xpose.msra.mxu0 %v2698_v37  ;;  %2202 = vmatpush3.xpose.msra.mxu1 %v2710_v49  ;;  %v3072_v42 = vsub.f32 %v370_v27, %v3056_v41  ;;  %v3666_v27 = vld [vmem:[#allocation5_spill] sm:$0xff] }
 0x1d3   :  { %2143 = vmatprep.subr.mxu0 %v2719_v58  ;;  %2203 = vmatprep.subr.mxu1 %v2725_v61  ;;  %v3621_v51 = vand.u32 4294901760, %v3037_v7 }
 0x1d5   :  { %v528_v5 = vsub.f32 %v3037_v7, %v3621_v51  ;;  %v3669_v51 = vld [vmem:[#allocation18_spill] sm:$0xff] }
 0x1d6   :  { %2144 = vmatpush3.xpose.msra.mxu0 %v2719_v58  ;;  %2204 = vmatpush3.xpose.msra.mxu1 %v2725_v61 }
 0x1d7   :  { %v529_v37 = vand.u32 4294901760, %v528_v5  ;;  %2145 = vmatprep.subr.mxu0 %v2734_v4  ;;  %2205 = vmatprep.subr.mxu1 %v2749_v16 }
 0x1d8   :  { %v355_v1 = vpop.permute.xlu1 %354 }
 0x1d9   :  { %v368_v30 = vmul.f32 %v355_v1, %v2583_v55  ;;  %2056 = vmatmul.mubr.f32.gmra.mxu0 %v529_v37  ;;  %v3074_v55 = vand.u32 4294901760, %v372_v32  ;;  %v376_v5 = vmul.f32 %v355_v1, %v3666_v27  ;;  %v3629_v1 = vand.u32 4294901760, %v3083_v22 }
 0x1da   :  { %2146 = vmatpush3.xpose.msra.mxu0 %v2734_v4  ;;  %2206 = vmatpush3.xpose.msra.mxu1 %v2749_v16 }
 0x1db   :  { %v3067_v58 = vand.u32 4294901760, %v368_v30  ;;  %2147 = vmatprep.subr.mxu0 %v2741_v9  ;;  %2207 = vmatprep.subr.mxu1 %v2764_v34  ;;  %3665 = vst [vmem:[#allocation35_spill] sm:$0xff] %v3074_v55  ;;  %v3096_v8 = vsub.f32 %v372_v32, %v3074_v55  ;;  %v3111_v32 = vsub.f32 %v373_v38, %v3085_v21  ;;  %v3670_v38 = vld [vmem:[#allocation22_spill] sm:$0xff] }
 0x1dc   :  { %v360_v15 = vpop.permute.xlu1 %359  ;;  %v568_v62 = vsub.f32 %v3083_v22, %v3629_v1 }
 0x1dd   :  { %v3078_v46 = vsub.f32 %v368_v30, %v3067_v58  ;;  %v369_v4 = vmul.f32 %v360_v15, %v2589_v57  ;;  %2114 = vmatprep.mubr.f32.mxu1 %v3067_v58  ;;  %v3116_v30 = vand.u32 4294901760, %v375_v33  ;;  %v577_v47 = vand.u32 4294901760, %v3096_v8 }
 0x1de   :  { %2148 = vmatpush3.xpose.msra.mxu0 %v2741_v9  ;;  %2208 = vmatpush3.xpose.msra.mxu1 %v2764_v34  ;;  %v3625_v9 = vand.u32 4294901760, %v3072_v42 }
 0x1df   :  { %v3090_v50 = vand.u32 4294901760, %v369_v4  ;;  %2149 = vmatprep.subr.mxu0 %v2762_v29  ;;  %2209 = vmatprep.subr.mxu1 %v2797_v28  ;;  %v3620_v57 = vand.u32 4294901760, %v3078_v46  ;;  %v578_v1 = vsub.f32 %v3096_v8, %v577_v47 }
 0x1e0   :  { %v291_v36 = vpop.permute.xlu1 %290 }
 0x1e1   :  { %v3103_v56 = vsub.f32 %v369_v4, %v3090_v50  ;;  %v314_v60 = vsub.f32 %v3667_v25, %v291_v36  ;;  %2115 = vmatmul.mubr.f32.gmra.mxu1 %v3090_v50  ;;  %v538_v37 = vsub.f32 %v3078_v46, %v3620_v57  ;;  %v3668_v4 = vld [vmem:[#allocation6_spill] sm:$0xff] }
 0x1e2   :  { %2117 = vmatprep.mubr.f32.mxu1 %v3056_v41  ;;  %2150 = vmatpush3.xpose.msra.mxu0 %v2762_v29  ;;  %v377_v27 = vmul.f32 %v360_v15, %v3668_v4  ;;  %v558_v29 = vsub.f32 %v3072_v42, %v3625_v9  ;;  %v3130_v15 = vand.u32 4294901760, %v376_v5  ;;  %v3143_v9 = vsub.f32 %v375_v33, %v3116_v30  ;;  %v3674_v33 = vld [vmem:[#allocation33_spill] sm:$0xff] }
 0x1e3   :  { %1683 = vperm.xlu1 %2361, %v314_v60   ;;  %v539_v36 = vand.u32 4294901760, %v538_v37  ;;  %2210 = vmatpush3.xpose.msra.mxu1 %v2797_v28  ;;  %v3626_v25 = vand.u32 4294901760, %v3103_v56  ;;  %v3671_v60 = vld [vmem:[#allocation32_spill] sm:$0xff] }
 0x1e4   :  { %v295_v57 = vpop.permute.xlu1 %294  ;;  %2151 = vmatprep.subr.mxu0 %v3669_v51  ;;  %2211 = vmatprep.subr.mxu1 %v3670_v38  ;;  %v559_v23 = vand.u32 4294901760, %v558_v29  ;;  %v597_v29 = vand.u32 4294901760, %v3128_v43 }
 0x1e5   :  { %v316_v37 = vsub.f32 %v3671_v60, %v295_v57  ;;  %2058 = vmatprep.mubr.f32.mxu0 %v539_v36  ;;  %2118 = vmatmul.mubr.f32.gmra.mxu1 %v3061_v63  ;;  %v548_v4 = vsub.f32 %v3103_v56, %v3626_v25  ;;  %v3145_v57 = vand.u32 4294901760, %v377_v27  ;;  %v3156_v63 = vsub.f32 %v376_v5, %v3130_v15 }
 0x1e6   :  { %2120 = vmatprep.mubr.f32.mxu1 %v3074_v55  ;;  %2152 = vmatpush3.xpose.msra.mxu0 %v3669_v51  ;;  %v3673_v51 = vld [vmem:[#allocation26_spill] sm:$0xff]  ;;  %v317_v55 = vsub.f32 %v3674_v33, %v297_v39  ;;  %v569_v39 = vand.u32 4294901760, %v568_v62  ;;  %v3675_v5 = vand.u32 4294901760, %v3111_v32 }
 0x1e7   :  { %1693 = vperm.xlu1 %2361, %v316_v37   ;;  %v549_v36 = vand.u32 4294901760, %v548_v4  ;;  %2212 = vmatpush3.xpose.msra.mxu1 %v3670_v38  ;;  %v301_v4 = vpop.permute.xlu0 %300  ;;  %v3163_v60 = vsub.f32 %v377_v27, %v3145_v57  ;;  %v617_v62 = vand.u32 4294901760, %v3156_v63 }
 0x1e8   :  { %v299_v25 = vpop.permute.xlu1 %298  ;;  %2153 = vmatprep.subr.mxu0 %v3672_v53  ;;  %2213 = vmatprep.subr.mxu1 %v3673_v51  ;;  %v588_v33 = vsub.f32 %v3111_v32, %v3675_v5 }
 0x1e9   :  { %v318_v37 = vsub.f32 %v2905_v48, %v299_v25  ;;  %2059 = vmatmul.mubr.f32.gmra.mxu0 %v549_v36  ;;  %2121 = vmatmul.mubr.f32.gmra.mxu1 %v3085_v21  ;;  %v607_v48 = vand.u32 4294901760, %v3143_v9  ;;  %v319_v36 = vsub.f32 %v2911_v17, %v301_v4  ;;  %v3677_v4 = vld [vmem:[#allocation28_spill] sm:$0xff]  ;;  %v618_v5 = vsub.f32 %v3156_v63, %v617_v62 }
 0x1ea   :  { %2061 = vmatprep.mubr.f32.mxu0 %v559_v23  ;;  %2123 = vmatprep.mubr.f32.mxu1 %v3098_v54  ;;  %v579_v23 = vand.u32 4294901760, %v578_v1  ;;  %v589_v1 = vand.u32 4294901760, %v588_v33 }
 0x1eb   :  { %1703 = vperm.xlu0 %2362, %v318_v37   ;;  %1698 = vperm.xlu1 %2361, %v317_v55   ;;  %v598_v55 = vsub.f32 %v3128_v43, %v597_v29  ;;  %v608_v17 = vsub.f32 %v3143_v9, %v607_v48  ;;  %v3676_v37 = vld [vmem:[#allocation23_spill] sm:$0xff] }
 0x1ec   :  { %v303_v25 = vpop.permute.xlu1 %302  ;;  %2154 = vmatpush3.xpose.msra.mxu0 %v3672_v53  ;;  %2214 = vmatpush3.xpose.msra.mxu1 %v3673_v51  ;;  %v305_v53 = vpop.permute.xlu0 %304 }
 0x1ed   :  { %v320_v27 = vsub.f32 %v2918_v59, %v303_v25  ;;  %2062 = vmatmul.mubr.f32.gmra.mxu0 %v569_v39  ;;  %2124 = vmatmul.mubr.f32.gmra.mxu1 %v3116_v30  ;;  %v627_v59 = vand.u32 4294901760, %v3163_v60  ;;  %v599_v39 = vand.u32 4294901760, %v598_v55  ;;  %v321_v33 = vsub.f32 %v2924_v44, %v305_v53 }
 0x1ee   :  { %2064 = vmatprep.mubr.f32.mxu0 %v579_v23  ;;  %2126 = vmatprep.mubr.f32.mxu1 %v3130_v15  ;;  %v3678_v25 = vand.u32 4294901760, %v2944_v10  ;;  %v609_v23 = vand.u32 4294901760, %v608_v17  ;;  %v619_v44 = vand.u32 4294901760, %v618_v5  ;;  %v3680_v55 = vand.u32 4294901760, %v2959_v0  ;;  %v3682_v17 = vld [vmem:[#allocation30_spill] sm:$0xff] }
 0x1ef   :  { %1713 = vperm.xlu0 %2362, %v320_v27   ;;  %1708 = vperm.xlu1 %2361, %v319_v36   ;;  %v628_v36 = vsub.f32 %v3163_v60, %v627_v59  ;;  %v3679_v27 = vld [vmem:[#allocation27_spill] sm:$0xff]  ;;  %v3686_v5 = vand.u32 4294901760, %v3037_v7 }
 0x1f0   :  { %2155 = vmatprep.subr.mxu0 %v3676_v37  ;;  %2215 = vmatprep.subr.mxu1 %v3677_v4 }
 0x1f1   :  { %2065 = vmatmul.mubr.f32.gmra.mxu0 %v589_v1  ;;  %2127 = vmatmul.mubr.f32.gmra.mxu1 %v3145_v57  ;;  %v629_v53 = vand.u32 4294901760, %v628_v36  ;;  %v3681_v1 = vand.u32 4294901760, %v2977_v31 }
 0x1f2   :  { %2156 = vmatpush3.xpose.msra.mxu0 %v3676_v37  ;;  %2216 = vmatpush3.xpose.msra.mxu1 %v3677_v4  ;;  %v3683_v37 = vand.u32 4294901760, %v2999_v52 }
 0x1f3   :  { %2067 = vmatprep.mubr.f32.mxu0 %v599_v39  ;;  %2217 = vmatprep.mubr.f32.mxu1 %v3678_v25  ;;  %v3685_v39 = vld [vmem:[#allocation7_spill] sm:$0xff] }
 0x1f4   :  { %1718 = vperm.xlu1 %2361, %v321_v33   ;;  %2157 = vmatprep.subr.mxu0 %v3679_v27 }
 0x1f5   :  { %2297 = vmatprep.subr.mxu1 %v2611_v2  ;;  %2068 = vmatmul.mubr.f32.gmra.mxu0 %v609_v23 }
 0x1f6   :  { %2158 = vmatpush3.xpose.msra.mxu0 %v3679_v27  ;;  %2218 = vmatmul.mubr.f32.vlgmr.msra.gmra.mxu1 %v3680_v55 }
 0x1f7   :  { %2298 = vmatpush3.xpose.msra.mxu1 %v2611_v2  ;;  %2070 = vmatprep.mubr.f32.mxu0 %v619_v44  ;;  %v3684_v2 = vand.u32 4294901760, %v3018_v11 }
 0x1f8   :  { %2220 = vmatprep.mubr.f32.mxu1 %v3681_v1  ;;  %2159 = vmatprep.subr.mxu0 %v3682_v17 }
 0x1f9   :  { %2299 = vmatprep.subr.mxu1 %v2624_v6  ;;  %2071 = vmatmul.mubr.f32.gmra.mxu0 %v629_v53 }
 0x1fa   :  { %2160 = vmatpush3.xpose.msra.mxu0 %v3682_v17  ;;  %2221 = vmatmul.mubr.f32.gmra.mxu1 %v3683_v37 }
 0x1fb   :  { %2300 = vmatpush3.xpose.msra.mxu1 %v2624_v6  ;;  %2161 = vmatprep.mubr.f32.mxu0 %v2944_v10  ;;  %v3687_v6 = vand.u32 4294901760, %v3078_v46  ;;  %v3688_v10 = vld [vmem:[#allocation8_spill] sm:$0xff] }
 0x1fc   :  { %2223 = vmatprep.mubr.f32.mxu1 %v3684_v2  ;;  %2241 = vmatprep.subr.mxu0 %v3685_v39 }
 0x1fd   :  { %2301 = vmatprep.subr.mxu1 %v2639_v12  ;;  %2162 = vmatmul.mubr.f32.vlgmr.msra.gmra.mxu0 %v2959_v0  ;;  %v3689_v0 = vand.u32 4294901760, %v3103_v56 }
 0x1fe   :  { %2224 = vmatmul.mubr.f32.gmra.mxu1 %v3686_v5  ;;  %2242 = vmatpush3.xpose.msra.mxu0 %v3685_v39 }
 0x1ff   :  { %2302 = vmatpush3.xpose.msra.mxu1 %v2639_v12  ;;  %2164 = vmatprep.mubr.f32.mxu0 %v2977_v31  ;;  %v3690_v12 = vand.u32 4294901760, %v3072_v42  ;;  %v3691_v31 = vld [vmem:[#allocation9_spill] sm:$0xff] }
 0x200   :  { %2226 = vmatprep.mubr.f32.mxu1 %v3687_v6  ;;  %2243 = vmatprep.subr.mxu0 %v3688_v10 }
 0x201   :  { %2303 = vmatprep.subr.mxu1 %v2656_v18  ;;  %2165 = vmatmul.mubr.f32.gmra.mxu0 %v2999_v52  ;;  %v3692_v52 = vand.u32 4294901760, %v3083_v22 }
 0x202   :  { %2227 = vmatmul.mubr.f32.gmra.mxu1 %v3689_v0  ;;  %2244 = vmatpush3.xpose.msra.mxu0 %v3688_v10 }
 0x203   :  { %2304 = vmatpush3.xpose.msra.mxu1 %v2656_v18  ;;  %2167 = vmatprep.mubr.f32.mxu0 %v3018_v11  ;;  %v3693_v18 = vld [vmem:[#allocation10_spill] sm:$0xff]  ;;  %v3694_v11 = vand.u32 4294901760, %v3111_v32 }
 0x204   :  { %2229 = vmatprep.mubr.f32.mxu1 %v3690_v12  ;;  %2245 = vmatprep.subr.mxu0 %v3691_v31 }
 0x205   :  { %2305 = vmatprep.subr.mxu1 %v2658_v19  ;;  %2168 = vmatmul.mubr.f32.gmra.mxu0 %v3037_v7  ;;  %v3707_v7 = vld [vmem:[#allocation34_spill] sm:$0xff] }
 0x206   :  { %2230 = vmatmul.mubr.f32.gmra.mxu1 %v3692_v52  ;;  %2246 = vmatpush3.xpose.msra.mxu0 %v3691_v31 }
 0x207   :  { %2306 = vmatpush3.xpose.msra.mxu1 %v2658_v19  ;;  %2170 = vmatprep.mubr.f32.mxu0 %v3078_v46  ;;  %v3695_v19 = vld [vmem:[#allocation11_spill] sm:$0xff] }
 0x208   :  { %2232 = vmatprep.mubr.f32.mxu1 %v577_v47  ;;  %2247 = vmatprep.subr.mxu0 %v3693_v18  ;;  %v3698_v47 = vld [vmem:[#allocation14_spill] sm:$0xff] }
 0x209   :  { %2307 = vmatprep.subr.mxu1 %v2661_v20  ;;  %2171 = vmatmul.mubr.f32.gmra.mxu0 %v3103_v56 }
 0x20a   :  { %2233 = vmatmul.mubr.f32.gmra.mxu1 %v3694_v11  ;;  %2248 = vmatpush3.xpose.msra.mxu0 %v3693_v18 }
 0x20b   :  { %2308 = vmatpush3.xpose.msra.mxu1 %v2661_v20  ;;  %2173 = vmatprep.mubr.f32.mxu0 %v3072_v42  ;;  %v3696_v20 = vld [vmem:[#allocation12_spill] sm:$0xff] }
 0x20c   :  { %2235 = vmatprep.mubr.f32.mxu1 %v597_v29  ;;  %2249 = vmatprep.subr.mxu0 %v3695_v19 }
 0x20d   :  { %2309 = vmatprep.subr.mxu1 %v2669_v24  ;;  %2174 = vmatmul.mubr.f32.gmra.mxu0 %v3083_v22 }
 0x20e   :  { %2236 = vmatmul.mubr.f32.gmra.mxu1 %v607_v48  ;;  %2250 = vmatpush3.xpose.msra.mxu0 %v3695_v19 }
 0x20f   :  { %2310 = vmatpush3.xpose.msra.mxu1 %v2669_v24  ;;  %2176 = vmatprep.mubr.f32.mxu0 %v3096_v8  ;;  %v3697_v24 = vld [vmem:[#allocation13_spill] sm:$0xff] }
 0x210   :  { %2238 = vmatprep.mubr.f32.mxu1 %v617_v62  ;;  %2251 = vmatprep.subr.mxu0 %v3696_v20 }
 0x211   :  { %2311 = vmatprep.subr.mxu1 %v2700_v40  ;;  %2177 = vmatmul.mubr.f32.gmra.mxu0 %v3111_v32 }
 0x212   :  { %2239 = vmatmul.mubr.f32.gmra.mxu1 %v627_v59  ;;  %2252 = vmatpush3.xpose.msra.mxu0 %v3696_v20 }
 0x213   :  { %2312 = vmatpush3.xpose.msra.mxu1 %v2700_v40  ;;  %2179 = vmatprep.mubr.f32.mxu0 %v3128_v43  ;;  %v3699_v40 = vld [vmem:[#allocation15_spill] sm:$0xff]  ;;  %v3701_v43 = vld [vmem:[#allocation17_spill] sm:$0xff] }
 0x214   :  { %2329 = vmatprep.mubr.f32.mxu1 %v2941_v45  ;;  %2253 = vmatprep.subr.mxu0 %v3697_v24 }
 0x215   :  { %2313 = vmatprep.subr.mxu1 %v2710_v49  ;;  %2180 = vmatmul.mubr.f32.gmra.mxu0 %v3143_v9 }
 0x216   :  { %2254 = vmatpush3.xpose.msra.mxu0 %v3697_v24  ;;  %2182 = vmatprep.mubr.f32.mxu0 %v3156_v63 }
 0x217   :  { %2314 = vmatpush3.xpose.msra.mxu1 %v2710_v49  ;;  %2255 = vmatprep.subr.mxu0 %v3698_v47  ;;  %v3700_v49 = vld [vmem:[#allocation16_spill] sm:$0xff] }
 0x218   :  { %2315 = vmatprep.subr.mxu1 %v2725_v61 }
 0x219   :  { %2183 = vmatmul.mubr.f32.gmra.mxu0 %v3163_v60 }
 0x21a   :  { %2256 = vmatpush3.xpose.msra.mxu0 %v3698_v47  ;;  %2273 = vmatprep.mubr.f32.mxu0 %v2941_v45  ;;  %v3706_v45 = vld [vmem:[#allocation31_spill] sm:$0xff] }
 0x21b   :  { %2316 = vmatpush3.xpose.msra.mxu1 %v2725_v61  ;;  %2257 = vmatprep.subr.mxu0 %v3699_v40  ;;  %v3702_v61 = vld [vmem:[#allocation19_spill] sm:$0xff] }
 0x21c   :  { %2317 = vmatprep.subr.mxu1 %v2749_v16 }
 0x21e   :  { %2258 = vmatpush3.xpose.msra.mxu0 %v3699_v40 }
 0x21f   :  { %2318 = vmatpush3.xpose.msra.mxu1 %v2749_v16  ;;  %2259 = vmatprep.subr.mxu0 %v3700_v49  ;;  %v3703_v16 = vld [vmem:[#allocation21_spill] sm:$0xff] }
 0x220   :  { %2319 = vmatprep.subr.mxu1 %v2764_v34 }
 0x222   :  { %2260 = vmatpush3.xpose.msra.mxu0 %v3700_v49 }
 0x223   :  { %2320 = vmatpush3.xpose.msra.mxu1 %v2764_v34  ;;  %2261 = vmatprep.subr.mxu0 %v3701_v43  ;;  %v3704_v34 = vld [vmem:[#allocation24_spill] sm:$0xff] }
 0x224   :  { %2321 = vmatprep.subr.mxu1 %v2797_v28 }
 0x226   :  { %2262 = vmatpush3.xpose.msra.mxu0 %v3701_v43 }
 0x227   :  { %2322 = vmatpush3.xpose.msra.mxu1 %v2797_v28  ;;  %2263 = vmatprep.subr.mxu0 %v3702_v61  ;;  %v3705_v28 = vld [vmem:[#allocation29_spill] sm:$0xff] }
 0x228   :  { %2323 = vmatprep.subr.mxu1 %v3670_v38 }
 0x22a   :  { %2264 = vmatpush3.xpose.msra.mxu0 %v3702_v61  ;;  %v1721_v61 = vlaneseq }
 0x22b   :  { %2324 = vmatpush3.xpose.msra.mxu1 %v3670_v38  ;;  %2265 = vmatprep.subr.mxu0 %v3703_v16 }
 0x22c   :  { %2325 = vmatprep.subr.mxu1 %v3673_v51 }
 0x22e   :  { %2266 = vmatpush3.xpose.msra.mxu0 %v3703_v16 }
 0x22f   :  { %2326 = vmatpush3.xpose.msra.mxu1 %v3673_v51  ;;  %2267 = vmatprep.subr.mxu0 %v3704_v34 }
 0x230   :  { %2327 = vmatprep.subr.mxu1 %v3677_v4 }
 0x232   :  { %2268 = vmatpush3.xpose.msra.mxu0 %v3704_v34 }
 0x233   :  { %2328 = vmatpush3.xpose.msra.mxu1 %v3677_v4  ;;  %2269 = vmatprep.subr.mxu0 %v3705_v28 }
 0x236   :  { %2330 = vmatmul.mubr.f32.vlgmr.msra.gmra.mxu1 %v2956_v13  ;;  %2270 = vmatpush3.xpose.msra.mxu0 %v3705_v28 }
 0x237   :  { %2332 = vmatprep.mubr.f32.mxu1 %v2973_v35  ;;  %2271 = vmatprep.subr.mxu0 %v3706_v45 }
 0x23a   :  { %2333 = vmatmul.mubr.f32.gmra.mxu1 %v2994_v3  ;;  %2272 = vmatpush3.xpose.msra.mxu0 %v3706_v45  ;;  %v1722_v45 = vshrl.u32 %v1721_v61, 7 }
 0x23b   :  { %2335 = vmatprep.mubr.f32.mxu1 %v3013_v14 }
 0x23d   :  { %2274 = vmatmul.mubr.f32.vlgmr.msra.gmra.mxu0 %v2956_v13  ;;  %v3708_v13 = vld [vmem:[#allocation35_spill] sm:$0xff] }
 0x23e   :  { %2336 = vmatmul.mubr.f32.gmra.mxu1 %v3032_v26  ;;  %2276 = vmatprep.mubr.f32.mxu0 %v2973_v35 }
 0x23f   :  { %2338 = vmatprep.mubr.f32.mxu1 %v3067_v58 }
 0x241   :  { %2277 = vmatmul.mubr.f32.gmra.mxu0 %v2994_v3 }
 0x242   :  { %2339 = vmatmul.mubr.f32.gmra.mxu1 %v3090_v50  ;;  %2279 = vmatprep.mubr.f32.mxu0 %v3013_v14 }
 0x243   :  { %2341 = vmatprep.mubr.f32.mxu1 %v3056_v41 }
 0x245   :  { %2280 = vmatmul.mubr.f32.gmra.mxu0 %v3032_v26 }
 0x246   :  { %2342 = vmatmul.mubr.f32.gmra.mxu1 %v3707_v7  ;;  %2282 = vmatprep.mubr.f32.mxu0 %v3067_v58 }
 0x247   :  { %2344 = vmatprep.mubr.f32.mxu1 %v3708_v13 }
 0x249   :  { %2283 = vmatmul.mubr.f32.gmra.mxu0 %v3090_v50 }
 0x24a   :  { %2345 = vmatmul.mubr.f32.gmra.mxu1 %v3085_v21  ;;  %2285 = vmatprep.mubr.f32.mxu0 %v3056_v41 }
 0x24b   :  { %2347 = vmatprep.mubr.f32.mxu1 %v3098_v54 }
 0x24d   :  { %2286 = vmatmul.mubr.f32.gmra.mxu0 %v3707_v7 }
 0x24e   :  { %2348 = vmatmul.mubr.f32.gmra.mxu1 %v3116_v30  ;;  %2288 = vmatprep.mubr.f32.mxu0 %v3708_v13 }
 0x24f   :  { %2350 = vmatprep.mubr.f32.mxu1 %v3130_v15 }
 0x251   :  { %2289 = vmatmul.mubr.f32.gmra.mxu0 %v3085_v21 }
 0x252   :  { %2351 = vmatmul.mubr.f32.gmra.mxu1 %v3145_v57  ;;  %2291 = vmatprep.mubr.f32.mxu0 %v3098_v54 }
 0x255   :  { %2292 = vmatmul.mubr.f32.gmra.mxu0 %v3116_v30 }
 0x256   :  { %2294 = vmatprep.mubr.f32.mxu0 %v3130_v15 }
 0x259   :  { %2295 = vmatmul.mubr.f32.gmra.mxu0 %v3145_v57 }
 0x25e   :  { %v1684_v47 = vpop.permute.xlu1 %1683 }
 0x262   :  { %v1694_v16 = vpop.permute.xlu1 %1693 }
 0x266   :  { %v1699_v13 = vpop.permute.xlu1 %1698 }
 0x271   :  { %v3343_v35 = vpop.f32.mrf.mxu1 }
 0x273   :  { %v3345_v3 = vpop.f32.mrf.mxu1 }
 0x279   :  { %v3349_v26 = vpop.f32.mrf.mxu0 }
 0x27a   :  { %v789_v61 = vadd.f32 %v3343_v35, %v3349_v26 }
 0x27b   :  { %v3353_v63 = vpop.f32.mrf.mxu0 }
 0x281   :  { %v3347_v14 = vpop.f32.mrf.mxu1 }
 0x283   :  { %v3351_v41 = vpop.f32.mrf.mxu1 }
 0x289   :  { %v3357_v42 = vpop.f32.mrf.mxu0 }
 0x28b   :  { %v3361_v22 = vpop.f32.mrf.mxu0 }
 0x291   :  { %v3355_v58 = vpop.f32.mrf.mxu1 }
 0x293   :  { %v3359_v46 = vpop.f32.mrf.mxu1 }
 0x299   :  { %v3365_v50 = vpop.f32.mrf.mxu0 }
 0x29b   :  { %v3371_v9 = vpop.f32.mrf.mxu0 }
 0x2a1   :  { %v3363_v21 = vpop.f32.mrf.mxu1 }
 0x2a3   :  { %v3367_v8 = vpop.f32.mrf.mxu1 }
 0x2a5   :  { %v3369_v54 = vpop.f32.mrf.mxu1 }
 0x2a7   :  { %v3373_v56 = vpop.f32.mrf.mxu1 }
 0x2a9   :  { %v3375_v32 = vpop.f32.mrf.mxu0  ;;  %v3377_v30 = vpop.f32.mrf.mxu1 }
 0x2ab   :  { %v3379_v38 = vpop.f32.mrf.mxu0  ;;  %v3381_v15 = vpop.f32.mrf.mxu1 }
 0x2ad   :  { %v3383_v57 = vpop.f32.mrf.mxu0  ;;  %v3385_v60 = vpop.f32.mrf.mxu1 }
 0x2ae   :  { %3709 = vst [vmem:[#allocation5_spill] sm:$0xff] %v3385_v60 }
 0x2af   :  { %v3387_v51 = vpop.f32.mrf.mxu0  ;;  %v3389_v29 = vpop.f32.mrf.mxu1 }
 0x2b0   :  { %3710 = vst [vmem:[#allocation25_spill] sm:$0xff] %v3389_v29 }
 0x2b1   :  { %v3391_v48 = vpop.f32.mrf.mxu0  ;;  %v3393_v62 = vpop.f32.mrf.mxu1 }
 0x2b2   :  { %3711 = vst [vmem:[#allocation6_spill] sm:$0xff] %v3393_v62  ;;  %v1689_v62 = vpop.permute.xlu0 %1688 }
 0x2b3   :  { %v3395_v59 = vpop.f32.mrf.mxu0  ;;  %v3397_v4 = vpop.f32.mrf.mxu1 }
 0x2b4   :  { %3712 = vst [vmem:[#allocation18_spill] sm:$0xff] %v3397_v4 }
 0x2b5   :  { %v3399_v33 = vpop.f32.mrf.mxu0 }
 0x2b6   :  { %3713 = vst [vmem:[#allocation22_spill] sm:$0xff] %v3399_v33  ;;  %v3403_v23 = vpop.f32.mrf.mxu1 }
 0x2b7   :  { %v3401_v25 = vpop.f32.mrf.mxu0 }
 0x2b8   :  { %3714 = vst [vmem:[#allocation32_spill] sm:$0xff] %v3401_v25  ;;  %v3409_v44 = vpop.f32.mrf.mxu1 }
 0x2b9   :  { %v3405_v36 = vpop.f32.mrf.mxu0 }
 0x2ba   :  { %3715 = vst [vmem:[#allocation20_spill] sm:$0xff] %v3405_v36  ;;  %v3411_v53 = vpop.f32.mrf.mxu1  ;;  %v1680_v36 = vld [vmem:[%s3564_s3] sm:$0x3]  ;;  %s2404_s3 = smov [#allocation2]  }
 0x2bb   :  { %v3407_v27 = vpop.f32.mrf.mxu0  ;;  %s1814_s22 = sshll.u32 %s2404_s3, 4  ;;  %s1815_s22 = int_to_ptr.vmem [resolvable:$true] %s1814_s22 }
 0x2bc   :  { %3716 = vst [vmem:[#allocation26_spill] sm:$0xff] %v3407_v27  ;;  %v3413_v17 = vpop.f32.mrf.mxu1  ;;  %v1723_v27 = vsub.s32 1, %v1722_v45  ;;  %s2379_s23 = scalar_lea.vmem %s1815_s22, 2048  ;;  %p2384_p1 = scmp.lt.s32.totalorder %s1815_s22, %s1815_s22 }
 0x2bd   :  { %v2163_v55 = vpop.f32.mrf.mxu0  ;;  %p2380_p0 = scmp.ne.s32.totalorder %s1815_s22, %s2379_s23  ;;  %p2385_p2 = scmp.lt.s32.totalorder %s2379_s23, %s2379_s23 }
 0x2be   :  { %v3415_v2 = vpop.f32.mrf.mxu1  ;;  %v984_v25 = vadd.f32 %v2163_v55, %v789_v61 }
 0x2bf   :  { %v976_v1 = vpop.f32.mrf.mxu0  ;;  %p2386_p3 = por %p2385_p2, %p2384_p1 }
 0x2c0   :  { %v3417_v5 = vpop.f32.mrf.mxu1 }
 0x2c1   :  { %v2166_v37 = vpop.f32.mrf.mxu0  ;;  %p2387_p4 = pnand %p2386_p3, %p2380_p0 }
 0x2c2   :  { %v3421_v10 = vpop.f32.mrf.mxu1 }
 0x2c3   :  { %v990_v39 = vpop.f32.mrf.mxu0 }
 0x2c4   :  { %v3425_v12 = vpop.f32.mrf.mxu1 }
 0x2c5   :  { %v3419_v6 = vpop.f32.mrf.mxu0  ;;  %3717 = vst [vmem:[#allocation33_spill] sm:$0xff] %v3425_v12 }
 0x2c6   :  { %v3429_v52 = vpop.f32.mrf.mxu1 }
 0x2c7   :  { %v3423_v0 = vpop.f32.mrf.mxu0  ;;  %3718 = vst [vmem:[#allocation23_spill] sm:$0xff] %v3429_v52 }
 0x2c8   :  { %v3433_v11 = vpop.f32.mrf.mxu1 }
 0x2c9   :  { %v3427_v31 = vpop.f32.mrf.mxu0  ;;  %3719 = vst [vmem:[#allocation28_spill] sm:$0xff] %v3433_v11  ;;  %v1735_v11 = vsub.s32 0, %v1722_v45 }
 0x2ca   :  { %v3437_v20 = vpop.f32.mrf.mxu1 }
 0x2cb   :  { %v3431_v18 = vpop.f32.mrf.mxu0  ;;  %3720 = vst [vmem:[#allocation27_spill] sm:$0xff] %v3437_v20  ;;  %v1724_v20 = vrot.slane %v1680_v36, %v1723_v27  ;;  %v1736_v33 = vrot.slane %v1680_v36, %v1735_v11  ;;  %v801_v27 = vadd.f32 %v3347_v14, %v3357_v42 }
 0x2cc   :  { %v3441_v40 = vpop.f32.mrf.mxu1 }
 0x2cd   :  { %v3435_v19 = vpop.f32.mrf.mxu0  ;;  %3722 = vst [vmem:[#allocation7_spill] sm:$0xff] %v3441_v40  ;;  %v1726_v52 = vmul.f32 %v1724_v20, %v1689_v62  ;;  %v1179_v62 = vadd.f32 %v3403_v23, %v984_v25  ;;  %v813_v25 = vadd.f32 %v3355_v58, %v3365_v50  ;;  %v807_v23 = vadd.f32 %v3359_v46, %v3371_v9 }
 0x2ce   :  { %v3445_v43 = vpop.f32.mrf.mxu1 }
 0x2cf   :  { %v3439_v24 = vpop.f32.mrf.mxu0  ;;  %3724 = vst [vmem:[#allocation9_spill] sm:$0xff] %v3445_v43  ;;  %v3475_v36 = vadd.f32 %v1736_v33, %v1726_v52  ;;  %v1005_v58 = vadd.f32 %v3423_v0, %v807_v23 }
 0x2d0   :  { %3721 = vst [vmem:[#allocation30_spill] sm:$0xff] %v3439_v24  ;;  %v3449_v28 = vpop.f32.mrf.mxu1 }
 0x2d1   :  { %v3443_v49 = vpop.f32.mrf.mxu0  ;;  %3726 = vst [vmem:[#allocation11_spill] sm:$0xff] %v3449_v28  ;;  %v1709_v28 = vpop.permute.xlu1 %1708 }
 0x2d2   :  { %3723 = vst [vmem:[#allocation8_spill] sm:$0xff] %v3443_v49  ;;  %v3453_v4 = vpop.f32.mrf.mxu1  ;;  %v1727_v49 = vmul.f32 %v1724_v20, %v1694_v16  ;;  %v1730_v14 = vmul.f32 %v1724_v20, %v1709_v28 }
 0x2d3   :  { %v3447_v34 = vpop.f32.mrf.mxu0  ;;  %3728 = vst [vmem:[#allocation13_spill] sm:$0xff] %v3453_v4  ;;  %v783_v4 = vadd.f32 %v3345_v3, %v3353_v63  ;;  %v795_v3 = vadd.f32 %v3351_v41, %v3361_v22  ;;  %v998_v63 = vadd.f32 %v2166_v37, %v801_v27  ;;  %v819_v27 = vadd.f32 %v3367_v8, %v3379_v38 }
 0x2d4   :  { %3725 = vst [vmem:[#allocation10_spill] sm:$0xff] %v3447_v34  ;;  %v3460_v43 = vpop.f32.mrf.mxu1  ;;  %v1704_v34 = vpop.permute.xlu0 %1703  ;;  %v3491_v28 = vadd.f32 %v1736_v33, %v1730_v14 }
 0x2d5   :  { %v3451_v7 = vpop.f32.mrf.mxu0  ;;  %3730 = vst [vmem:[#allocation15_spill] sm:$0xff] %v3460_v43  ;;  %v1728_v43 = vmul.f32 %v1724_v20, %v1699_v13  ;;  %v977_v45 = vadd.f32 %v976_v1, %v783_v4  ;;  %v1729_v26 = vmul.f32 %v1724_v20, %v1704_v34  ;;  %v991_v1 = vadd.f32 %v990_v39, %v795_v3 }
 0x2d6   :  { %3727 = vst [vmem:[#allocation12_spill] sm:$0xff] %v3451_v7  ;;  %v1195_v39 = vadd.f32 %v3411_v53, %v998_v63  ;;  %v837_v3 = vadd.f32 %v3369_v54, %v3383_v57 }
 0x2d7   :  { %v3458_v40 = vpop.f32.mrf.mxu0  ;;  %v3481_v4 = vadd.f32 %v1736_v33, %v1728_v43  ;;  %v1171_v13 = vadd.f32 %v3409_v44, %v977_v45  ;;  %v3488_v52 = vadd.f32 %v1736_v33, %v1729_v26  ;;  %v825_v44 = vadd.f32 %v3363_v21, %v3375_v32 }
 0x2d8   :  { %3729 = vst [vmem:[#allocation14_spill] sm:$0xff] %v3458_v40  ;;  %v1725_v40 = vmul.f32 %v1724_v20, %v1684_v47  ;;  %v1714_v12 = vpop.permute.xlu0 %1713  ;;  %v3479_v47 = vadd.f32 %v1736_v33, %v1727_v49 }
 0x2d9   :  { %v3464_v29 = vpop.f32.mrf.mxu0  ;;  %v1731_v41 = vmul.f32 %v1724_v20, %v1714_v12  ;;  %v1026_v21 = vadd.f32 %v3427_v31, %v825_v44 }
 0x2da   :  { %3731 = vst [vmem:[#allocation16_spill] sm:$0xff] %v3464_v29  ;;  %v1719_v29 = vpop.permute.xlu1 %1718  ;;  %v3477_v11 = vadd.f32 %v1736_v33, %v1725_v40 }
 0x2db   :  { %v3470_v35 = vpop.f32.mrf.mxu0  ;;  %v1732_v22 = vmul.f32 %v1724_v20, %v1719_v29  ;;  %v1012_v29 = vadd.f32 %v3419_v6, %v813_v25  ;;  %v3499_v61 = vadd.f32 %v1736_v33, %v1731_v41  ;;  %v1227_v57 = vadd.f32 %v3421_v10, %v1026_v21  ;;  %v3739_v21 = vld [vmem:[#allocation25_spill] sm:$0xff] }
 0x2dd   :  { %v3501_v53 = vadd.f32 %v1736_v33, %v1732_v22  ;;  %v1211_v33 = vadd.f32 %v3415_v2, %v1012_v29  ;;  %v843_v22 = vadd.f32 %v3381_v15, %v3395_v59  ;;  %v3734_v29 = vld [vmem:[#allocation8_spill] sm:$0xff] }
 0x2f6   :  { %v2331_v7 = vpop.f32.mrf.mxu1 }
 0x2f8   :  { %v1586_v60 = vpop.f32.mrf.mxu1 }
 0x2fa   :  { %v2334_v24 = vpop.f32.mrf.mxu1 }
 0x2fc   :  { %v1598_v55 = vpop.f32.mrf.mxu1 }
 0x2fd   :  { %v2275_v42 = vpop.f32.mrf.mxu0 }
 0x2fe   :  { %v1416_v16 = vadd.f32 %v2275_v42, %v1179_v62  ;;  %v2337_v34 = vpop.f32.mrf.mxu1  ;;  %v1203_v62 = vadd.f32 %v3417_v5, %v1005_v58 }
 0x2ff   :  { %v1409_v37 = vpop.f32.mrf.mxu0 }
 0x300   :  { %v1593_v40 = vadd.f32 %v2331_v7, %v1416_v16  ;;  %v1410_v49 = vadd.f32 %v1409_v37, %v1171_v13  ;;  %v1610_v43 = vpop.f32.mrf.mxu1  ;;  %v1187_v7 = vadd.f32 %v3413_v17, %v991_v1  ;;  %v1019_v17 = vadd.f32 %v3431_v18, %v819_v27  ;;  %v3738_v27 = vld [vmem:[#allocation32_spill] sm:$0xff] }
 0x301   :  { %v2278_v50 = vpop.f32.mrf.mxu0  ;;  %v1040_v1 = vadd.f32 %v3435_v19, %v837_v3  ;;  %v3732_v19 = vld [vmem:[#allocation33_spill] sm:$0xff] }
 0x302   :  { %v1746_v46 = vadd.f32 %v3475_v36, %v1593_v40  ;;  %v1587_v9 = vadd.f32 %v1586_v60, %v1410_v49  ;;  %v1428_v12 = vadd.f32 %v2278_v50, %v1195_v39  ;;  %v2340_v20 = vpop.f32.mrf.mxu1  ;;  %v1219_v25 = vadd.f32 %v3732_v19, %v1019_v17  ;;  %v3733_v39 = vld [vmem:[#allocation30_spill] sm:$0xff] }
 0x303   :  { %v1421_v32 = vpop.f32.mrf.mxu0 }
 0x304   :  { %v1762_v6 = vmul.f32 0.01, %v1746_v46  ;;  %v1745_v0 = vadd.f32 %v3477_v11, %v1587_v9  ;;  %v1605_v45 = vadd.f32 %v2334_v24, %v1428_v12  ;;  %v1422_v26 = vadd.f32 %v1421_v32, %v1187_v7  ;;  %v1622_v60 = vpop.f32.mrf.mxu1  ;;  %v3736_v12 = vld [vmem:[#allocation22_spill] sm:$0xff]  ;;  %v3737_v7 = vld [vmem:[#allocation5_spill] sm:$0xff] }
 0x305   :  { %v2281_v63 = vpop.f32.mrf.mxu0  ;;  %v831_v24 = vadd.f32 %v3373_v56, %v3387_v51  ;;  %v855_v32 = vadd.f32 %v3739_v21, %v3738_v27  ;;  %v3752_v21 = vld [vmem:[#allocation11_spill] sm:$0xff] }
 0x306   :  { %v1778_v8 = vmax.f32 %v1746_v46, %v1762_v6  ;;  %v1761_v38 = vmul.f32 0.01, %v1745_v0  ;;  %v1748_v31 = vadd.f32 %v3481_v4, %v1605_v45  ;;  %v1599_v14 = vadd.f32 %v1598_v55, %v1422_v26  ;;  %v2343_v42 = vpop.f32.mrf.mxu1  ;;  %v3740_v6 = vld [vmem:[#allocation10_spill] sm:$0xff] }
 0x307   :  { %v1440_v16 = vadd.f32 %v2281_v63, %v1211_v33  ;;  %v1433_v54 = vpop.f32.mrf.mxu0  ;;  %v849_v55 = vadd.f32 %v3377_v30, %v3391_v48  ;;  %v1033_v44 = vadd.f32 %v3733_v39, %v831_v24  ;;  %v3735_v48 = vld [vmem:[#allocation23_spill] sm:$0xff] }
 0x308   :  { %1794 = vst [vmem:[#allocation2 + $0x8] sm:$0xff] %v1778_v8  ;;  %v1777_v2 = vmax.f32 %v1745_v0, %v1761_v38  ;;  %v1764_v18 = vmul.f32 0.01, %v1748_v31  ;;  %v1747_v5 = vadd.f32 %v3479_v47, %v1599_v14  ;;  %v1434_v13 = vadd.f32 %v1433_v54, %v1203_v62  ;;  %v1634_v41 = vpop.f32.mrf.mxu1  ;;  %v3741_v8 = vld [vmem:[#allocation12_spill] sm:$0xff] }
 0x309   :  { %v1617_v56 = vadd.f32 %v2337_v34, %v1440_v16  ;;  %v2284_v51 = vpop.f32.mrf.mxu0  ;;  %v1054_v58 = vadd.f32 %v3734_v29, %v849_v55  ;;  %v1243_v46 = vadd.f32 %v3735_v48, %v1040_v1  ;;  %v1047_v0 = vadd.f32 %v3740_v6, %v843_v22  ;;  %v3743_v1 = vld [vmem:[#allocation27_spill] sm:$0xff]  ;;  %v3749_v29 = vld [vmem:[#allocation18_spill] sm:$0xff] }
 0x30a   :  { %1793 = vst [vmem:[#allocation2] sm:$0xff] %v1777_v2  ;;  %v1780_v23 = vmax.f32 %v1748_v31, %v1764_v18  ;;  %v1763_v10 = vmul.f32 0.01, %v1747_v5  ;;  %v1611_v37 = vadd.f32 %v1610_v43, %v1434_v13  ;;  %v1452_v40 = vadd.f32 %v2284_v51, %v1227_v57  ;;  %v2346_v49 = vpop.f32.mrf.mxu1  ;;  %v3742_v31 = vld [vmem:[#allocation28_spill] sm:$0xff] }
 0x30b   :  { %v1750_v50 = vadd.f32 %v3491_v28, %v1617_v56  ;;  %v1445_v30 = vpop.f32.mrf.mxu0  ;;  %v861_v43 = vadd.f32 %v3737_v7, %v3736_v12  ;;  %v1235_v14 = vadd.f32 %v3742_v31, %v1033_v44  ;;  %v1259_v16 = vadd.f32 %v3743_v1, %v1054_v58  ;;  %v3745_v56 = vld [vmem:[#allocation7_spill] sm:$0xff]  ;;  %v3748_v44 = vld [vmem:[#allocation26_spill] sm:$0xff] }
 0x30c   :  { %1796 = vst [vmem:[#allocation2 + $0x18] sm:$0xff] %v1780_v23  ;;  %v1779_v15 = vmax.f32 %v1747_v5, %v1763_v10  ;;  %v1749_v59 = vadd.f32 %v3488_v52, %v1611_v37  ;;  %v1629_v34 = vadd.f32 %v2340_v20, %v1452_v40  ;;  %v1446_v9 = vadd.f32 %v1445_v30, %v1219_v25  ;;  %v1646_v26 = vpop.f32.mrf.mxu1  ;;  %v3744_v5 = vld [vmem:[#allocation14_spill] sm:$0xff]  ;;  %v3746_v37 = vld [vmem:[#allocation20_spill] sm:$0xff]  ;;  %v3750_v30 = vld [vmem:[#allocation9_spill] sm:$0xff] }
 0x30d   :  { %v1766_v45 = vmul.f32 0.01, %v1750_v50  ;;  %v2287_v3 = vpop.f32.mrf.mxu0  ;;  %v1068_v20 = vadd.f32 %v3741_v8, %v861_v43  ;;  %v1061_v13 = vadd.f32 %v3744_v5, %v855_v32  ;;  %v1251_v51 = vadd.f32 %v3745_v56, %v1047_v0  ;;  %v3747_v40 = vld [vmem:[#allocation6_spill] sm:$0xff]  ;;  %v3753_v8 = vld [vmem:[#allocation13_spill] sm:$0xff]  ;;  %v3754_v31 = vld [vmem:[#allocation15_spill] sm:$0xff] }
 0x30e   :  { %1795 = vst [vmem:[#allocation2 + $0x10] sm:$0xff] %v1779_v15  ;;  %v1765_v17 = vmul.f32 0.01, %v1749_v59  ;;  %v1752_v33 = vadd.f32 %v3501_v53, %v1629_v34  ;;  %v1623_v63 = vadd.f32 %v1622_v60, %v1446_v9  ;;  %v1464_v62 = vadd.f32 %v2287_v3, %v1243_v46  ;;  %v2349_v55 = vpop.f32.mrf.mxu1  ;;  %v3751_v9 = vld [vmem:[#allocation16_spill] sm:$0xff] }
 0x30f   :  { %v1782_v38 = vmax.f32 %v1750_v50, %v1766_v45  ;;  %v1457_v24 = vpop.f32.mrf.mxu0  ;;  %v873_v39 = vadd.f32 %v3747_v40, %v3746_v37  ;;  %v1275_v48 = vadd.f32 %v3750_v30, %v1068_v20  ;;  %v1267_v32 = vadd.f32 %v3752_v21, %v1061_v13 }
 0x310   :  { %v1781_v54 = vmax.f32 %v1749_v59, %v1765_v17  ;;  %v1768_v57 = vmul.f32 0.01, %v1752_v33  ;;  %v1751_v2 = vadd.f32 %v3499_v61, %v1623_v63  ;;  %v1641_v18 = vadd.f32 %v2343_v42, %v1464_v62  ;;  %v1658_v43 = vpop.f32.mrf.mxu1 }
 0x311   :  { %1798 = vst [vmem:[#allocation2 + $0x28] sm:$0xff] %v1782_v38  ;;  %v1458_v22 = vadd.f32 %v1457_v24, %v1235_v14  ;;  %v2290_v60 = vpop.f32.mrf.mxu0  ;;  %v867_v42 = vadd.f32 %v3749_v29, %v3748_v44  ;;  %v1082_v12 = vadd.f32 %v3751_v9, %v873_v39 }
 0x312   :  { %1797 = vst [vmem:[#allocation2 + $0x20] sm:$0xff] %v1781_v54  ;;  %v1784_v19 = vmax.f32 %v1752_v33, %v1768_v57  ;;  %v1767_v25 = vmul.f32 0.01, %v1751_v2  ;;  %v1754_v23 = vadd.f32 %v3475_v36, %v1641_v18  ;;  %v1476_v10 = vadd.f32 %v2290_v60, %v1259_v16 }
 0x313   :  { %v1635_v58 = vadd.f32 %v1634_v41, %v1458_v22  ;;  %v1469_v50 = vpop.f32.mrf.mxu0  ;;  %v1075_v36 = vadd.f32 %v3470_v35, %v867_v42  ;;  %v1291_v20 = vadd.f32 %v3753_v8, %v1082_v12 }
 0x314   :  { %1800 = vst [vmem:[#allocation2 + $0x38] sm:$0xff] %v1784_v19  ;;  %v1783_v46 = vmax.f32 %v1751_v2, %v1767_v25  ;;  %v1770_v15 = vmul.f32 0.01, %v1754_v23  ;;  %v1653_v59 = vadd.f32 %v2346_v49, %v1476_v10  ;;  %v1470_v34 = vadd.f32 %v1469_v50, %v1251_v51 }
 0x315   :  { %v1753_v7 = vadd.f32 %v3477_v11, %v1635_v58  ;;  %v2293_v27 = vpop.f32.mrf.mxu0  ;;  %v2352_v11 = vpop.f32.mrf.mxu1  ;;  %v1283_v14 = vadd.f32 %v3754_v31, %v1075_v36 }
 0x316   :  { %1799 = vst [vmem:[#allocation2 + $0x30] sm:$0xff] %v1783_v46  ;;  %v1786_v41 = vmax.f32 %v1754_v23, %v1770_v15  ;;  %v1756_v6 = vadd.f32 %v3481_v4, %v1653_v59  ;;  %v1647_v0 = vadd.f32 %v1646_v26, %v1470_v34  ;;  %v1488_v45 = vadd.f32 %v2293_v27, %v1275_v48 }
 0x317   :  { %v1769_v3 = vmul.f32 0.01, %v1753_v7  ;;  %v1481_v17 = vpop.f32.mrf.mxu0  ;;  %v1670_v5 = vpop.f32.mrf.mxu1 }
 0x318   :  { %1802 = vst [vmem:[#allocation2 + $0x48] sm:$0xff] %v1786_v41  ;;  %v1772_v49 = vmul.f32 0.01, %v1756_v6  ;;  %v1755_v33 = vadd.f32 %v3479_v47, %v1647_v0  ;;  %v1665_v63 = vadd.f32 %v2349_v55, %v1488_v45  ;;  %v1482_v35 = vadd.f32 %v1481_v17, %v1267_v32 }
 0x319   :  { %v1785_v62 = vmax.f32 %v1753_v7, %v1769_v3  ;;  %v2296_v38 = vpop.f32.mrf.mxu0 }
 0x31a   :  { %v1788_v24 = vmax.f32 %v1756_v6, %v1772_v49  ;;  %v1771_v1 = vmul.f32 0.01, %v1755_v33  ;;  %v1758_v4 = vadd.f32 %v3491_v28, %v1665_v63  ;;  %v1659_v26 = vadd.f32 %v1658_v43, %v1482_v35 }
 0x31b   :  { %1801 = vst [vmem:[#allocation2 + $0x40] sm:$0xff] %v1785_v62  ;;  %v1500_v16 = vadd.f32 %v2296_v38, %v1291_v20  ;;  %v1493_v54 = vpop.f32.mrf.mxu0 }
 0x31c   :  { %1804 = vst [vmem:[#allocation2 + $0x58] sm:$0xff] %v1788_v24  ;;  %v1787_v57 = vmax.f32 %v1755_v33, %v1771_v1  ;;  %v1774_v47 = vmul.f32 0.01, %v1758_v4  ;;  %v1757_v2 = vadd.f32 %v3488_v52, %v1659_v26  ;;  %v1494_v18 = vadd.f32 %v1493_v54, %v1283_v14 }
 0x31d   :  { %v1677_v13 = vadd.f32 %v2352_v11, %v1500_v16 }
 0x31e   :  { %1803 = vst [vmem:[#allocation2 + $0x50] sm:$0xff] %v1787_v57  ;;  %v1790_v55 = vmax.f32 %v1758_v4, %v1774_v47  ;;  %v1773_v22 = vmul.f32 0.01, %v1757_v2  ;;  %v1671_v60 = vadd.f32 %v1670_v5, %v1494_v18 }
 0x31f   :  { %v1760_v56 = vadd.f32 %v3501_v53, %v1677_v13 }
 0x320   :  { %1806 = vst [vmem:[#allocation2 + $0x68] sm:$0xff] %v1790_v55  ;;  %v1789_v28 = vmax.f32 %v1757_v2, %v1773_v22  ;;  %v1759_v51 = vadd.f32 %v3499_v61, %v1671_v60 }
 0x321   :  { %v1776_v19 = vmul.f32 0.01, %v1760_v56 }
 0x322   :  { %1805 = vst [vmem:[#allocation2 + $0x60] sm:$0xff] %v1789_v28  ;;  %v1775_v25 = vmul.f32 0.01, %v1759_v51 }
 0x323   :  { %v1792_v23 = vmax.f32 %v1760_v56, %v1776_v19 }
 0x324   :  { %v1791_v52 = vmax.f32 %v1759_v51, %v1775_v25 }
 0x325   :  { %1808 = vst [vmem:[#allocation2 + $0x78] sm:$0xff] %v1792_v23 }
 0x326   :  { %1807 = vst [vmem:[#allocation2 + $0x70] sm:$0xff] %v1791_v52 }
 0x327   :  { %2390 = shalt.err (!%p2387_p4)
}
 0x328   :  { %s2405_s24 = smov 128   ;;  %s2406_s25 = smov 8  }
 0x329   :  { %1820 = dma.vmem_to_hbm [thread:$0]  %s1815_s22, 2048, %s3565_s4, [#allocation3], %s2405_s24, %s2405_s24, %s2406_s25  }
 0x32a   :  { %2399 = dma.done.wait [#allocation3], 2048  }
 0x32b   :  { %2400 = vsyncadd [#allocation3], 4294965248 }
 0x32c   :  { %1824 = vsyncpa [#allocation3], 1 }

</bundles_post_ra>
